<compile_context>
chip_gen: v5e
topology: v5e:2x2
jax: 0.10.0
libtpu: 0.0.40
codegen_flags: <defaults>
</compile_context>

<pallas_src>
import functools

import jax
import jax.numpy as jnp
from jax.experimental import pallas as pl
from jax.experimental.pallas import tpu as pltpu


def _round_up(x, m):
    return ((x + m - 1) // m) * m


def _layer_norm(x, gamma, beta, eps=1e-6):
    mean = jnp.mean(x, axis=-1, keepdims=True)
    var = jnp.mean((x - mean) ** 2, axis=-1, keepdims=True)
    inv = jax.lax.rsqrt(var + eps)
    return (x - mean) * inv * gamma + beta


def transformer_kernel(x_ref, w1_ref, b1_ref, w2_ref, b2_ref,
                       g1_ref, be1_ref, g2_ref, be2_ref, o_ref,
                       *, num_heads, head_dim):
    nH, d = num_heads, head_dim
    H = nH * d

    x = x_ref[...]                                 # (TM, H)
    tm = x.shape[0]
    xf = x.astype(jnp.float32)

    # ---------------- SelfAttention (contracted over heads) -----------------
    # Token axis lives in lanes (lane-dense since head_dim d << 128):
    #   q[h, i, t] = x[t, h*d + i]
    xt = xf.T                                      # (H, TM)
    q = xt.reshape(nH, d, tm)                      # (nH, d, TM)

    # scores[i, j, t] = sum_h q[h, i, t] * q[h, j, t]   -> (d, d, TM)
    scores = jnp.sum(q[:, :, None, :] * q[:, None, :, :], axis=0)

    # softmax over j (axis=1): sublane reductions, exp on the EUP.
    scores = scores - jnp.max(scores, axis=1, keepdims=True)
    p = jnp.exp(scores)
    denom = jnp.sum(p, axis=1, keepdims=True)
    # approx=True would move the divide fully to the EUP but loosens accuracy
    # beyond the 1e-4 check used below; keep the exact reciprocal.
    p = p * pl.reciprocal(denom, approx=False)     # (d, d, TM)

    # dh[t, h*d + i] = sum_j p[i, j, t] * q[h, j, t]
    dh_t = jnp.sum(p[None, :, :, :] * q[:, None, :, :], axis=2)   # (nH, d, TM)
    dh = dh_t.reshape(H, tm).T                     # (TM, H)

    # --------------- residual + LayerNorm 1 (dropout = identity) ------------
    g1 = g1_ref[...].astype(jnp.float32)           # (1, H)
    be1 = be1_ref[...].astype(jnp.float32)
    y = _layer_norm(xf + dh, g1, be1)

    # --------------- PositionWiseFeedForward (MXU matmuls) ------------------
    w1 = w1_ref[...]                               # (H, 4H) — no f32 upcast
    b1 = b1_ref[...].astype(jnp.float32)           # (1, 4H)
    h1 = jnp.dot(y.astype(w1.dtype), w1, preferred_element_type=jnp.float32) + b1
    h1 = jnp.maximum(h1, 0.01 * h1)                # leaky_relu (slope 0.01)

    w2 = w2_ref[...]                               # (4H, H)
    b2 = b2_ref[...].astype(jnp.float32)           # (1, H)
    h2 = jnp.dot(h1.astype(w2.dtype), w2, preferred_element_type=jnp.float32) + b2

    # --------------- residual + LayerNorm 2 ---------------------------------
    g2 = g2_ref[...].astype(jnp.float32)
    be2 = be2_ref[...].astype(jnp.float32)
    out = _layer_norm(y + h2, g2, be2)

    o_ref[...] = out.astype(o_ref.dtype)


def _default_tm():
    """128 rows on v5-class chips and older, 256 on v6e / v7x and newer."""
    try:
        kind = jax.devices()[0].device_kind.lower()
    except Exception:
        return 128
    if any(tag in kind for tag in ("v2", "v3", "v4", "v5")):
        return 128
    return 256


def transformer_forward(seq, params, *, num_heads, tm=None):
    B, S, H = seq.shape
    assert H % num_heads == 0
    d = H // num_heads
    w1, b1, w2, b2, g1, be1, g2, be2 = params
    FF = w1.shape[1]

    N = B * S
    if tm is None:
        tm = _default_tm()
    # Never tile wider than the (8-row padded) problem: avoids pure-padding work
    # on tiny inputs while still defaulting to 128/256 rows at realistic N.
    tm = max(8, min(tm, _round_up(N, 8)))
    n_pad = _round_up(N, tm)

    x = seq.reshape(N, H)
    if n_pad != N:
        x = jnp.pad(x, ((0, n_pad - N), (0, 0)))   # zero rows: safe for LN (eps)

    kernel = functools.partial(transformer_kernel, num_heads=num_heads, head_dim=d)

    def const_spec(arr):
        # Grid-invariant block: constant index map, DMA'd once across the grid.
        return pl.BlockSpec(arr.shape, lambda i: (0, 0))

    itemsize = jnp.dtype(seq.dtype).itemsize
    param_bytes = sum(int(p.size) * jnp.dtype(p.dtype).itemsize for p in params)
    cost = pl.CostEstimate(
        flops=int(n_pad * (4 * H * FF + 4 * d * H + 12 * H)),
        transcendentals=int(n_pad * (d * d + 2)),
        bytes_accessed=int(2 * n_pad * H * itemsize + param_bytes),
    )

    out = pl.pallas_call(
        kernel,
        out_shape=jax.ShapeDtypeStruct((n_pad, H), seq.dtype),
        grid_spec=pltpu.PrefetchScalarGridSpec(
            num_scalar_prefetch=0,
            grid=(n_pad // tm,),
            in_specs=[
                pl.BlockSpec((tm, H), lambda i: (i, 0)),   # rows of the sequence
                const_spec(w1), const_spec(b1), const_spec(w2), const_spec(b2),
                const_spec(g1), const_spec(be1), const_spec(g2), const_spec(be2),
            ],
            out_specs=pl.BlockSpec((tm, H), lambda i: (i, 0)),
        ),
        compiler_params=pltpu.CompilerParams(
            dimension_semantics=("parallel",),
            vmem_limit_bytes=64 * 1024 * 1024,
        ),
        cost_estimate=cost,
    )(x, w1, b1, w2, b2, g1, be1, g2, be2)

    return out[:N].reshape(B, S, H)


# --------------------------- pure-JAX reference --------------------------------
def transformer_ref(seq, params, num_heads):
    w1, b1, w2, b2, g1, be1, g2, be2 = params
    B, S, H = seq.shape
    d = H // num_heads
    x4 = seq.reshape(B, S, num_heads, d)
    q = jnp.swapaxes(x4, -1, -2)                          # (B,S,d,nH)
    scores = q @ jnp.swapaxes(q, -1, -2)                  # (B,S,d,d)
    p = jax.nn.softmax(scores, axis=-1)
    out = p @ q                                           # (B,S,d,nH)
    dh = jnp.swapaxes(out, -1, -2).reshape(B, S, H)

    def ln(x, g, b):
        m = x.mean(-1, keepdims=True)
        v = ((x - m) ** 2).mean(-1, keepdims=True)
        return (x - m) / jnp.sqrt(v + 1e-6) * g.reshape(-1) + b.reshape(-1)

    y = ln(seq + dh, g1, be1)
    h1 = y @ w1 + b1.reshape(-1)
    h1 = jnp.where(h1 > 0, h1, 0.01 * h1)
    h2 = h1 @ w2 + b2.reshape(-1)
    return ln(y + h2, g2, be2)


if __name__ == "__main__":
    def init_params(key, H, FF):
        k_w1, k_b1, k_w2, k_b2 = jax.random.split(key, 4)
        bound1 = 1.0 / (H ** 0.5)
        bound2 = 1.0 / (FF ** 0.5)
        w1 = jax.random.uniform(k_w1, (H, FF), jnp.float32, -bound1, bound1)
        b1 = jax.random.uniform(k_b1, (1, FF), jnp.float32, -bound1, bound1)
        w2 = jax.random.uniform(k_w2, (FF, H), jnp.float32, -bound2, bound2)
        b2 = jax.random.uniform(k_b2, (1, H), jnp.float32, -bound2, bound2)
        g1 = jnp.ones((1, H), jnp.float32)
        be1 = jnp.zeros((1, H), jnp.float32)
        g2 = jnp.ones((1, H), jnp.float32)
        be2 = jnp.zeros((1, H), jnp.float32)
        return (w1, b1, w2, b2, g1, be1, g2, be2)

    key = jax.random.PRNGKey(0)
    k1, k2, k3, k4 = jax.random.split(key, 4)

    # Case 1: small spec-suggested shape (single tile).
    B, S, H, heads = 2, 8, 32, 4
    params = init_params(k1, H, 4 * H)
    seq = jax.random.normal(k2, (B, S, H), jnp.float32)
    out = jax.block_until_ready(transformer_forward(seq, params, num_heads=heads))
    ref = jax.block_until_ready(transformer_ref(seq, params, heads))
    assert out.shape == (B, S, H)
    err1 = float(jnp.max(jnp.abs(out - ref)))
    assert jnp.allclose(out, ref, atol=1e-4, rtol=1e-4), err1

    # Case 2: module-default hidden (H=64), N=400 -> multi-step grid + padded tail.
    B, S, H, heads = 2, 200, 64, 4
    params = init_params(k3, H, 4 * H)
    seq = jax.random.normal(k4, (B, S, H), jnp.float32)
    out = jax.block_until_ready(transformer_forward(seq, params, num_heads=heads))
    ref = jax.block_until_ready(transformer_ref(seq, params, heads))
    assert out.shape == (B, S, H)
    err2 = float(jnp.max(jnp.abs(out - ref)))
    assert jnp.allclose(out, ref, atol=2e-4, rtol=2e-4), err2

    print("KERNEL_OK")
</pallas_src>

<mosaic_0001>
module attributes {stable_mosaic.version = 11 : i64} {
  func.func @transformer_kernel(%arg0: i32, %arg1: memref<16x32xf32, #tpu.memory_space<vmem>>, %arg2: memref<32x128xf32, #tpu.memory_space<vmem>>, %arg3: memref<1x128xf32, #tpu.memory_space<vmem>>, %arg4: memref<128x32xf32, #tpu.memory_space<vmem>>, %arg5: memref<1x32xf32, #tpu.memory_space<vmem>>, %arg6: memref<1x32xf32, #tpu.memory_space<vmem>>, %arg7: memref<1x32xf32, #tpu.memory_space<vmem>>, %arg8: memref<1x32xf32, #tpu.memory_space<vmem>>, %arg9: memref<1x32xf32, #tpu.memory_space<vmem>>, %arg10: memref<16x32xf32, #tpu.memory_space<vmem>>) attributes {dimension_semantics = [#tpu.dimension_semantics<parallel>], iteration_bounds = array<i64: 1>, scalar_prefetch = 0 : i64, scratch_operands = 0 : i64, tpu.core_type = #tpu.core_type<tc>, window_params = [{transform_indices = @transform_0, window_bounds = array<i64: 16, 32>}, {pipeline_mode = #tpu.pipeline_mode<synchronous>, transform_indices = @transform_1, window_bounds = array<i64: 32, 128>}, {pipeline_mode = #tpu.pipeline_mode<synchronous>, transform_indices = @transform_2, window_bounds = array<i64: 1, 128>}, {pipeline_mode = #tpu.pipeline_mode<synchronous>, transform_indices = @transform_3, window_bounds = array<i64: 128, 32>}, {pipeline_mode = #tpu.pipeline_mode<synchronous>, transform_indices = @transform_4, window_bounds = array<i64: 1, 32>}, {pipeline_mode = #tpu.pipeline_mode<synchronous>, transform_indices = @transform_5, window_bounds = array<i64: 1, 32>}, {pipeline_mode = #tpu.pipeline_mode<synchronous>, transform_indices = @transform_6, window_bounds = array<i64: 1, 32>}, {pipeline_mode = #tpu.pipeline_mode<synchronous>, transform_indices = @transform_7, window_bounds = array<i64: 1, 32>}, {pipeline_mode = #tpu.pipeline_mode<synchronous>, transform_indices = @transform_8, window_bounds = array<i64: 1, 32>}, {transform_indices = @transform_9, window_bounds = array<i64: 16, 32>}]} {
    %c0 = arith.constant 0 : index
    %c0_0 = arith.constant 0 : index
    %0 = vector.load %arg1[%c0, %c0_0] : memref<16x32xf32, #tpu.memory_space<vmem>>, vector<16x32xf32>
    %1 = tpu.transpose %0, [1, 0] : vector<16x32xf32> -> vector<32x16xf32>
    %2 = vector.shape_cast %1 : vector<32x16xf32> to vector<4x8x16xf32>
    %3 = vector.shape_cast %2 : vector<4x8x16xf32> to vector<4x8x1x16xf32>
    %4 = vector.shape_cast %2 : vector<4x8x16xf32> to vector<4x1x8x16xf32>
    %5 = vector.broadcast %3 : vector<4x8x1x16xf32> to vector<4x8x8x16xf32>
    %6 = vector.broadcast %4 : vector<4x1x8x16xf32> to vector<4x8x8x16xf32>
    %7 = arith.mulf %5, %6 : vector<4x8x8x16xf32>
    %cst = arith.constant dense<0.000000e+00> : vector<8x8x16xf32>
    %8 = vector.multi_reduction <add>, %7, %cst [0] : vector<4x8x8x16xf32> to vector<8x8x16xf32>
    %cst_1 = arith.constant dense<0xFF800000> : vector<8x16xf32>
    %9 = vector.multi_reduction <maximumf>, %8, %cst_1 [1] : vector<8x8x16xf32> to vector<8x16xf32>
    %10 = vector.shape_cast %9 : vector<8x16xf32> to vector<8x1x16xf32>
    %11 = vector.broadcast %10 : vector<8x1x16xf32> to vector<8x8x16xf32>
    %12 = arith.subf %8, %11 : vector<8x8x16xf32>
    %13 = math.exp %12 : vector<8x8x16xf32>
    %cst_2 = arith.constant dense<0.000000e+00> : vector<8x16xf32>
    %14 = vector.multi_reduction <add>, %13, %cst_2 [1] : vector<8x8x16xf32> to vector<8x16xf32>
    %15 = vector.shape_cast %14 : vector<8x16xf32> to vector<8x1x16xf32>
    %16 = tpu.reciprocal %15 : vector<8x1x16xf32> -> vector<8x1x16xf32>
    %17 = vector.broadcast %16 : vector<8x1x16xf32> to vector<8x8x16xf32>
    %18 = arith.mulf %13, %17 : vector<8x8x16xf32>
    %19 = vector.shape_cast %18 : vector<8x8x16xf32> to vector<1x8x8x16xf32>
    %20 = vector.shape_cast %2 : vector<4x8x16xf32> to vector<4x1x8x16xf32>
    %21 = vector.broadcast %19 : vector<1x8x8x16xf32> to vector<4x8x8x16xf32>
    %22 = vector.broadcast %20 : vector<4x1x8x16xf32> to vector<4x8x8x16xf32>
    %23 = arith.mulf %21, %22 : vector<4x8x8x16xf32>
    %cst_3 = arith.constant dense<0.000000e+00> : vector<4x8x16xf32>
    %24 = vector.multi_reduction <add>, %23, %cst_3 [2] : vector<4x8x8x16xf32> to vector<4x8x16xf32>
    %25 = vector.shape_cast %24 : vector<4x8x16xf32> to vector<32x16xf32>
    %26 = tpu.transpose %25, [1, 0] : vector<32x16xf32> -> vector<16x32xf32>
    %c0_4 = arith.constant 0 : index
    %c0_5 = arith.constant 0 : index
    %27 = vector.load %arg6[%c0_4, %c0_5] : memref<1x32xf32, #tpu.memory_space<vmem>>, vector<1x32xf32>
    %c0_6 = arith.constant 0 : index
    %c0_7 = arith.constant 0 : index
    %28 = vector.load %arg7[%c0_6, %c0_7] : memref<1x32xf32, #tpu.memory_space<vmem>>, vector<1x32xf32>
    %29 = arith.addf %0, %26 : vector<16x32xf32>
    %cst_8 = arith.constant dense<0.000000e+00> : vector<16xf32>
    %30 = vector.multi_reduction <add>, %29, %cst_8 [1] : vector<16x32xf32> to vector<16xf32>
    %31 = vector.shape_cast %30 : vector<16xf32> to vector<16x1xf32>
    %cst_9 = arith.constant 3.200000e+01 : f32
    %32 = vector.broadcast %cst_9 : f32 to vector<16x1xf32>
    %33 = arith.divf %31, %32 : vector<16x1xf32>
    %34 = vector.broadcast %33 : vector<16x1xf32> to vector<16x32xf32>
    %35 = arith.subf %29, %34 : vector<16x32xf32>
    %36 = arith.mulf %35, %35 : vector<16x32xf32>
    %cst_10 = arith.constant dense<0.000000e+00> : vector<16xf32>
    %37 = vector.multi_reduction <add>, %36, %cst_10 [1] : vector<16x32xf32> to vector<16xf32>
    %38 = vector.shape_cast %37 : vector<16xf32> to vector<16x1xf32>
    %cst_11 = arith.constant 3.200000e+01 : f32
    %39 = vector.broadcast %cst_11 : f32 to vector<16x1xf32>
    %40 = arith.divf %38, %39 : vector<16x1xf32>
    %cst_12 = arith.constant 9.99999997E-7 : f32
    %41 = vector.broadcast %cst_12 : f32 to vector<16x1xf32>
    %42 = arith.addf %40, %41 : vector<16x1xf32>
    %43 = math.rsqrt %42 : vector<16x1xf32>
    %44 = vector.broadcast %33 : vector<16x1xf32> to vector<16x32xf32>
    %45 = arith.subf %29, %44 : vector<16x32xf32>
    %46 = vector.broadcast %43 : vector<16x1xf32> to vector<16x32xf32>
    %47 = arith.mulf %45, %46 : vector<16x32xf32>
    %48 = vector.broadcast %27 : vector<1x32xf32> to vector<16x32xf32>
    %49 = arith.mulf %47, %48 : vector<16x32xf32>
    %50 = vector.broadcast %28 : vector<1x32xf32> to vector<16x32xf32>
    %51 = arith.addf %49, %50 : vector<16x32xf32>
    %c0_13 = arith.constant 0 : index
    %c0_14 = arith.constant 0 : index
    %52 = vector.load %arg2[%c0_13, %c0_14] : memref<32x128xf32, #tpu.memory_space<vmem>>, vector<32x128xf32>
    %c0_15 = arith.constant 0 : index
    %c0_16 = arith.constant 0 : index
    %53 = vector.load %arg3[%c0_15, %c0_16] : memref<1x128xf32, #tpu.memory_space<vmem>>, vector<1x128xf32>
    %cst_17 = arith.constant dense<0.000000e+00> : vector<16x128xf32>
    %54 = tpu.matmul %51, %52, %cst_17 {dimension_numbers = #tpu.dot_dimension_numbers<[1], [0], [0], [1], [0, 0, 1, 1], [], []>} : vector<16x32xf32>, vector<32x128xf32>, vector<16x128xf32> -> vector<16x128xf32>
    %55 = vector.broadcast %53 : vector<1x128xf32> to vector<16x128xf32>
    %56 = arith.addf %54, %55 : vector<16x128xf32>
    %cst_18 = arith.constant 0.00999999977 : f32
    %57 = vector.broadcast %cst_18 : f32 to vector<16x128xf32>
    %58 = arith.mulf %57, %56 : vector<16x128xf32>
    %59 = arith.maximumf %56, %58 : vector<16x128xf32>
    %c0_19 = arith.constant 0 : index
    %c0_20 = arith.constant 0 : index
    %60 = vector.load %arg4[%c0_19, %c0_20] : memref<128x32xf32, #tpu.memory_space<vmem>>, vector<128x32xf32>
    %c0_21 = arith.constant 0 : index
    %c0_22 = arith.constant 0 : index
    %61 = vector.load %arg5[%c0_21, %c0_22] : memref<1x32xf32, #tpu.memory_space<vmem>>, vector<1x32xf32>
    %cst_23 = arith.constant dense<0.000000e+00> : vector<16x32xf32>
    %62 = tpu.matmul %59, %60, %cst_23 {dimension_numbers = #tpu.dot_dimension_numbers<[1], [0], [0], [1], [0, 0, 1, 1], [], []>} : vector<16x128xf32>, vector<128x32xf32>, vector<16x32xf32> -> vector<16x32xf32>
    %63 = vector.broadcast %61 : vector<1x32xf32> to vector<16x32xf32>
    %64 = arith.addf %62, %63 : vector<16x32xf32>
    %c0_24 = arith.constant 0 : index
    %c0_25 = arith.constant 0 : index
    %65 = vector.load %arg8[%c0_24, %c0_25] : memref<1x32xf32, #tpu.memory_space<vmem>>, vector<1x32xf32>
    %c0_26 = arith.constant 0 : index
    %c0_27 = arith.constant 0 : index
    %66 = vector.load %arg9[%c0_26, %c0_27] : memref<1x32xf32, #tpu.memory_space<vmem>>, vector<1x32xf32>
    %67 = arith.addf %51, %64 : vector<16x32xf32>
    %cst_28 = arith.constant dense<0.000000e+00> : vector<16xf32>
    %68 = vector.multi_reduction <add>, %67, %cst_28 [1] : vector<16x32xf32> to vector<16xf32>
    %69 = vector.shape_cast %68 : vector<16xf32> to vector<16x1xf32>
    %cst_29 = arith.constant 3.200000e+01 : f32
    %70 = vector.broadcast %cst_29 : f32 to vector<16x1xf32>
    %71 = arith.divf %69, %70 : vector<16x1xf32>
    %72 = vector.broadcast %71 : vector<16x1xf32> to vector<16x32xf32>
    %73 = arith.subf %67, %72 : vector<16x32xf32>
    %74 = arith.mulf %73, %73 : vector<16x32xf32>
    %cst_30 = arith.constant dense<0.000000e+00> : vector<16xf32>
    %75 = vector.multi_reduction <add>, %74, %cst_30 [1] : vector<16x32xf32> to vector<16xf32>
    %76 = vector.shape_cast %75 : vector<16xf32> to vector<16x1xf32>
    %cst_31 = arith.constant 3.200000e+01 : f32
    %77 = vector.broadcast %cst_31 : f32 to vector<16x1xf32>
    %78 = arith.divf %76, %77 : vector<16x1xf32>
    %cst_32 = arith.constant 9.99999997E-7 : f32
    %79 = vector.broadcast %cst_32 : f32 to vector<16x1xf32>
    %80 = arith.addf %78, %79 : vector<16x1xf32>
    %81 = math.rsqrt %80 : vector<16x1xf32>
    %82 = vector.broadcast %71 : vector<16x1xf32> to vector<16x32xf32>
    %83 = arith.subf %67, %82 : vector<16x32xf32>
    %84 = vector.broadcast %81 : vector<16x1xf32> to vector<16x32xf32>
    %85 = arith.mulf %83, %84 : vector<16x32xf32>
    %86 = vector.broadcast %65 : vector<1x32xf32> to vector<16x32xf32>
    %87 = arith.mulf %85, %86 : vector<16x32xf32>
    %88 = vector.broadcast %66 : vector<1x32xf32> to vector<16x32xf32>
    %89 = arith.addf %87, %88 : vector<16x32xf32>
    %c0_33 = arith.constant 0 : index
    %c0_34 = arith.constant 0 : index
    %90 = vector.load %arg10[%c0_33, %c0_34] : memref<16x32xf32, #tpu.memory_space<vmem>>, vector<16x32xf32>
    tpu.vector_store %arg10[%c0_33, %c0_34], %89 {strides = array<i32>} : memref<16x32xf32, #tpu.memory_space<vmem>>, vector<16x32xf32>,
    return
  }
  func.func @transform_0(%arg0: i32) -> (i32, i32) {
    %c0_i32 = arith.constant 0 : i32
    %c0_i32_0 = arith.constant 0 : i32
    return %arg0, %c0_i32 : i32, i32
  }
  func.func @transform_1(%arg0: i32) -> (i32, i32) {
    %c0_i32 = arith.constant 0 : i32
    %c0_i32_0 = arith.constant 0 : i32
    %c0_i32_1 = arith.constant 0 : i32
    return %c0_i32, %c0_i32_0 : i32, i32
  }
  func.func @transform_2(%arg0: i32) -> (i32, i32) {
    %c0_i32 = arith.constant 0 : i32
    %c0_i32_0 = arith.constant 0 : i32
    %c0_i32_1 = arith.constant 0 : i32
    return %c0_i32, %c0_i32_0 : i32, i32
  }
  func.func @transform_3(%arg0: i32) -> (i32, i32) {
    %c0_i32 = arith.constant 0 : i32
    %c0_i32_0 = arith.constant 0 : i32
    %c0_i32_1 = arith.constant 0 : i32
    return %c0_i32, %c0_i32_0 : i32, i32
  }
  func.func @transform_4(%arg0: i32) -> (i32, i32) {
    %c0_i32 = arith.constant 0 : i32
    %c0_i32_0 = arith.constant 0 : i32
    %c0_i32_1 = arith.constant 0 : i32
    return %c0_i32, %c0_i32_0 : i32, i32
  }
  func.func @transform_5(%arg0: i32) -> (i32, i32) {
    %c0_i32 = arith.constant 0 : i32
    %c0_i32_0 = arith.constant 0 : i32
    %c0_i32_1 = arith.constant 0 : i32
    return %c0_i32, %c0_i32_0 : i32, i32
  }
  func.func @transform_6(%arg0: i32) -> (i32, i32) {
    %c0_i32 = arith.constant 0 : i32
    %c0_i32_0 = arith.constant 0 : i32
    %c0_i32_1 = arith.constant 0 : i32
    return %c0_i32, %c0_i32_0 : i32, i32
  }
  func.func @transform_7(%arg0: i32) -> (i32, i32) {
    %c0_i32 = arith.constant 0 : i32
    %c0_i32_0 = arith.constant 0 : i32
    %c0_i32_1 = arith.constant 0 : i32
    return %c0_i32, %c0_i32_0 : i32, i32
  }
  func.func @transform_8(%arg0: i32) -> (i32, i32) {
    %c0_i32 = arith.constant 0 : i32
    %c0_i32_0 = arith.constant 0 : i32
    %c0_i32_1 = arith.constant 0 : i32
    return %c0_i32, %c0_i32_0 : i32, i32
  }
  func.func @transform_9(%arg0: i32) -> (i32, i32) {
    %c0_i32 = arith.constant 0 : i32
    %c0_i32_0 = arith.constant 0 : i32
    return %arg0, %c0_i32 : i32, i32
  }
}

</mosaic_0001>

<bundles_post_ra>
// kernel: tpu_custom_call.1
= control target key start
LH: loop header
LB: loop body
LE: loop exit
PB: predicated region body
PF: predicated region fallthrough
CT: control target
= control target key end

     0   :  { %s1852_s0 = inlined_call_operand.vmem [shape: f32[16,32], index: 0, kind: input, shape index: {}]   ;;  %s1853_s1 = inlined_call_operand.vmem [shape: f32[32,128], index: 1, kind: input, shape index: {}]   ;;  %s1854_s2 = inlined_call_operand.vmem [shape: f32[1,128], index: 2, kind: input, shape index: {}]   ;;  %s1855_s3 = inlined_call_operand.vmem [shape: f32[128,32], index: 3, kind: input, shape index: {}]   ;;  %s1856_s4 = inlined_call_operand.vmem [shape: f32[1,32], index: 4, kind: input, shape index: {}]   ;;  %s1857_s5 = inlined_call_operand.vmem [shape: f32[1,32], index: 5, kind: input, shape index: {}]   ;;  %s1858_s6 = inlined_call_operand.vmem [shape: f32[1,32], index: 6, kind: input, shape index: {}]   ;;  %s1859_s7 = inlined_call_operand.vmem [shape: f32[1,32], index: 7, kind: input, shape index: {}]   ;;  %s1860_s8 = inlined_call_operand.vmem [shape: f32[1,32], index: 8, kind: input, shape index: {}]   ;;  %s1861_s9 = inlined_call_operand.hbm [shape: f32[16,32], index: 9, kind: output, shape index: {}]  }
   0x1   :  { %v33_v0 = vld [vmem:[%s1852_s0] sm:$0xff] }
   0x2   :  { %35 = vxpose.xlu0.b32.start [1/2] (short) (narrow) %v33_v0, 32 }
   0x3   :  { %14 = vsyncpa [#allocation3], 0  ;;  %v34_v1 = vld [vmem:[%s1852_s0 + $0x8] sm:$0xff]  ;;  %vm1862_vm0 = vcmask 130048   ;;  %s1196_s20 = smov 128   ;;  %s1197_s21 = smov 8  }
   0xa   :  { %36 = vxpose.xlu0.b32.end [2/2] (short) (narrow) %v34_v1, 32 }
  0xa6   :  { %v1254_v2 = vpop.trf.xlu0 }
  0xa7   :  { %v71_v3 = vrot.slane %v1254_v2, 1  ;;  %v72_v4 = vrot.slane %v1254_v2, 2  ;;  %v73_v5 = vrot.slane %v1254_v2, 3  ;;  %v74_v6 = vrot.slane %v1254_v2, 4 }
  0xa8   :  { %v75_v7 = vrot.slane %v1254_v2, 5  ;;  %v76_v8 = vrot.slane %v1254_v2, 6  ;;  %v77_v9 = vrot.slane %v1254_v2, 7  ;;  %v99_v10 = vperm.slane %v1254_v2, 0 }
  0xa9   :  { %v100_v11 = vperm.slane %v71_v3, 0  ;;  %v101_v12 = vperm.slane %v72_v4, 0  ;;  %v102_v13 = vperm.slane %v73_v5, 0  ;;  %v103_v14 = vperm.slane %v74_v6, 0 }
  0xaa   :  { %v104_v15 = vperm.slane %v75_v7, 0  ;;  %v105_v16 = vperm.slane %v76_v8, 0  ;;  %v106_v17 = vperm.slane %v77_v9, 0  ;;  %v163_v18 = vmul.f32 %v99_v10, %v1254_v2 }
  0xab   :  { %v164_v19 = vmul.f32 %v100_v11, %v1254_v2  ;;  %v165_v20 = vmul.f32 %v101_v12, %v1254_v2  ;;  %v166_v21 = vmul.f32 %v102_v13, %v1254_v2  ;;  %v167_v22 = vmul.f32 %v103_v14, %v1254_v2 }
  0xac   :  { %v168_v23 = vmul.f32 %v104_v15, %v1254_v2  ;;  %v169_v24 = vmul.f32 %v105_v16, %v1254_v2  ;;  %v170_v25 = vmul.f32 %v106_v17, %v1254_v2  ;;  %v196_v26 = vsel %vm1862_vm0, %v163_v18, 0.0 }
  0xad   :  { %v203_v27 = vsel %vm1862_vm0, %v164_v19, 0.0  ;;  %v210_v28 = vsel %vm1862_vm0, %v165_v20, 0.0  ;;  %v217_v29 = vsel %vm1862_vm0, %v166_v21, 0.0  ;;  %v1279_v31 = vsel %vm1862_vm0, %v167_v22, 0.0 }
  0xae   :  { %v1276_v30 = vpop.trf.xlu0  ;;  %v1282_v32 = vsel %vm1862_vm0, %v168_v23, 0.0  ;;  %v1285_v33 = vsel %vm1862_vm0, %v169_v24, 0.0  ;;  %v1288_v34 = vsel %vm1862_vm0, %v170_v25, 0.0 }
  0xaf   :  { %v78_v35 = vrot.slane %v1276_v30, 1  ;;  %v79_v36 = vrot.slane %v1276_v30, 2  ;;  %v80_v37 = vrot.slane %v1276_v30, 3  ;;  %v81_v38 = vrot.slane %v1276_v30, 4 }
  0xb0   :  { %v82_v39 = vrot.slane %v1276_v30, 5  ;;  %v83_v40 = vrot.slane %v1276_v30, 6  ;;  %v84_v41 = vrot.slane %v1276_v30, 7  ;;  %v107_v42 = vperm.slane %v1276_v30, 0 }
  0xb1   :  { %v108_v43 = vperm.slane %v78_v35, 0  ;;  %v109_v44 = vperm.slane %v79_v36, 0  ;;  %v110_v45 = vperm.slane %v80_v37, 0  ;;  %v111_v46 = vperm.slane %v81_v38, 0 }
  0xb2   :  { %v112_v47 = vperm.slane %v82_v39, 0  ;;  %v113_v48 = vperm.slane %v83_v40, 0  ;;  %v114_v49 = vperm.slane %v84_v41, 0  ;;  %v171_v50 = vmul.f32 %v107_v42, %v1276_v30 }
  0xb3   :  { %v172_v51 = vmul.f32 %v108_v43, %v1276_v30  ;;  %v173_v52 = vmul.f32 %v109_v44, %v1276_v30  ;;  %v174_v53 = vmul.f32 %v110_v45, %v1276_v30  ;;  %v175_v54 = vmul.f32 %v111_v46, %v1276_v30 }
  0xb4   :  { %v1304_v55 = vmul.f32 %v112_v47, %v1276_v30  ;;  %v1307_v56 = vmul.f32 %v113_v48, %v1276_v30  ;;  %v1310_v57 = vmul.f32 %v114_v49, %v1276_v30  ;;  %v197_v58 = vsel %vm1862_vm0, %v171_v50, 0.0 }
  0xb5   :  { %v198_v59 = vadd.f32 %v197_v58, %v196_v26  ;;  %v204_v60 = vsel %vm1862_vm0, %v172_v51, 0.0  ;;  %v211_v61 = vsel %vm1862_vm0, %v173_v52, 0.0  ;;  %v218_v62 = vsel %vm1862_vm0, %v174_v53, 0.0 }
  0xb6   :  { %v1316_v63 = vpop.trf.xlu0  ;;  %v205_v0 = vadd.f32 %v204_v60, %v203_v27  ;;  %v212_v1 = vadd.f32 %v211_v61, %v210_v28  ;;  %v219_v3 = vadd.f32 %v218_v62, %v217_v29  ;;  %v225_v4 = vsel %vm1862_vm0, %v175_v54, 0.0 }
  0xb7   :  { %v85_v5 = vrot.slane %v1316_v63, 1  ;;  %v86_v6 = vrot.slane %v1316_v63, 2  ;;  %v87_v7 = vrot.slane %v1316_v63, 3  ;;  %v88_v8 = vrot.slane %v1316_v63, 4 }
  0xb8   :  { %v89_v9 = vrot.slane %v1316_v63, 5  ;;  %v90_v10 = vrot.slane %v1316_v63, 6  ;;  %v91_v11 = vrot.slane %v1316_v63, 7  ;;  %v115_v12 = vperm.slane %v1316_v63, 0 }
  0xb9   :  { %v116_v13 = vperm.slane %v85_v5, 0  ;;  %v117_v14 = vperm.slane %v86_v6, 0  ;;  %v118_v15 = vperm.slane %v87_v7, 0  ;;  %v119_v16 = vperm.slane %v88_v8, 0 }
  0xba   :  { %v120_v17 = vperm.slane %v89_v9, 0  ;;  %v121_v18 = vperm.slane %v90_v10, 0  ;;  %v122_v19 = vperm.slane %v91_v11, 0  ;;  %v179_v20 = vmul.f32 %v115_v12, %v1316_v63 }
  0xbb   :  { %v180_v21 = vmul.f32 %v116_v13, %v1316_v63  ;;  %v181_v22 = vmul.f32 %v117_v14, %v1316_v63  ;;  %v182_v23 = vmul.f32 %v118_v15, %v1316_v63  ;;  %v183_v24 = vmul.f32 %v119_v16, %v1316_v63 }
  0xbc   :  { %v184_v25 = vmul.f32 %v120_v17, %v1316_v63  ;;  %v185_v26 = vmul.f32 %v121_v18, %v1316_v63  ;;  %v186_v27 = vmul.f32 %v122_v19, %v1316_v63  ;;  %v199_v28 = vsel %vm1862_vm0, %v179_v20, 0.0 }
  0xbd   :  { %v200_v29 = vadd.f32 %v199_v28, %v198_v59  ;;  %v206_v35 = vsel %vm1862_vm0, %v180_v21, 0.0  ;;  %v213_v36 = vsel %vm1862_vm0, %v181_v22, 0.0  ;;  %v220_v37 = vsel %vm1862_vm0, %v182_v23, 0.0 }
  0xbe   :  { %v1339_v38 = vpop.trf.xlu0  ;;  %v207_v39 = vadd.f32 %v206_v35, %v205_v0  ;;  %v214_v40 = vadd.f32 %v213_v36, %v212_v1  ;;  %v221_v41 = vadd.f32 %v220_v37, %v219_v3  ;;  %v226_v42 = vadd.f32 %v225_v4, %v1279_v31 }
  0xbf   :  { %v92_v43 = vrot.slane %v1339_v38, 1  ;;  %v93_v44 = vrot.slane %v1339_v38, 2  ;;  %v94_v45 = vrot.slane %v1339_v38, 3  ;;  %v95_v46 = vrot.slane %v1339_v38, 4 }
  0xc0   :  { %v96_v47 = vrot.slane %v1339_v38, 5  ;;  %v97_v48 = vrot.slane %v1339_v38, 6  ;;  %v98_v49 = vrot.slane %v1339_v38, 7  ;;  %v123_v50 = vperm.slane %v1339_v38, 0 }
  0xc1   :  { %v124_v51 = vperm.slane %v92_v43, 0  ;;  %v125_v52 = vperm.slane %v93_v44, 0  ;;  %v126_v53 = vperm.slane %v94_v45, 0  ;;  %v127_v31 = vperm.slane %v95_v46, 0 }
  0xc2   :  { %v128_v54 = vperm.slane %v96_v47, 0  ;;  %v129_v58 = vperm.slane %v97_v48, 0  ;;  %v130_v59 = vperm.slane %v98_v49, 0  ;;  %v187_v60 = vmul.f32 %v123_v50, %v1339_v38 }
  0xc3   :  { %v188_v61 = vmul.f32 %v124_v51, %v1339_v38  ;;  %v189_v62 = vmul.f32 %v125_v52, %v1339_v38  ;;  %v190_v0 = vmul.f32 %v126_v53, %v1339_v38  ;;  %v191_v1 = vmul.f32 %v127_v31, %v1339_v38 }
  0xc4   :  { %v192_v3 = vmul.f32 %v128_v54, %v1339_v38  ;;  %v193_v4 = vmul.f32 %v129_v58, %v1339_v38  ;;  %v194_v5 = vmul.f32 %v130_v59, %v1339_v38  ;;  %v201_v6 = vsel %vm1862_vm0, %v187_v60, 0.0 }
  0xc5   :  { %v1359_v7 = vadd.f32 %v201_v6, %v200_v29  ;;  %v208_v8 = vsel %vm1862_vm0, %v188_v61, 0.0  ;;  %v215_v9 = vsel %vm1862_vm0, %v189_v62, 0.0  ;;  %v222_v10 = vsel %vm1862_vm0, %v190_v0, 0.0 }
  0xc6   :  { %v1364_v11 = vadd.f32 %v208_v8, %v207_v39  ;;  %v1366_v12 = vadd.f32 %v215_v9, %v214_v40  ;;  %v1368_v13 = vadd.f32 %v222_v10, %v221_v41  ;;  %v227_v14 = vsel %vm1862_vm0, %v183_v24, 0.0 }
  0xc7   :  { %v228_v15 = vadd.f32 %v227_v14, %v226_v42  ;;  %v229_v16 = vsel %vm1862_vm0, %v191_v1, 0.0  ;;  %v232_v17 = vsel %vm1862_vm0, %v1304_v55, 0.0  ;;  %v234_v18 = vsel %vm1862_vm0, %v184_v25, 0.0 }
  0xc8   :  { %v233_v19 = vadd.f32 %v232_v17, %v1282_v32  ;;  %v236_v20 = vsel %vm1862_vm0, %v192_v3, 0.0  ;;  %v239_v21 = vsel %vm1862_vm0, %v1307_v56, 0.0  ;;  %v241_v22 = vsel %vm1862_vm0, %v185_v26, 0.0 }
  0xc9   :  { %v1380_v23 = vadd.f32 %v229_v16, %v228_v15  ;;  %v240_v24 = vadd.f32 %v239_v21, %v1285_v33  ;;  %v243_v28 = vsel %vm1862_vm0, %v193_v4, 0.0  ;;  %v246_v55 = vsel %vm1862_vm0, %v1310_v57, 0.0 }
  0xca   :  { %v235_v29 = vadd.f32 %v234_v18, %v233_v19  ;;  %v247_v25 = vadd.f32 %v246_v55, %v1288_v34  ;;  %v248_v32 = vsel %vm1862_vm0, %v186_v27, 0.0  ;;  %v250_v35 = vsel %vm1862_vm0, %v194_v5, 0.0 }
  0xcb   :  { %v242_v36 = vadd.f32 %v241_v22, %v240_v24  ;;  %v252_v56 = vsel %vm1862_vm0, %v1359_v7, -inf  ;;  %v259_v26 = vsel %vm1862_vm0, %v1364_v11, -inf  ;;  %v266_v33 = vsel %vm1862_vm0, %v1366_v12, -inf }
  0xcc   :  { %v1395_v37 = vadd.f32 %v236_v20, %v235_v29  ;;  %v249_v57 = vadd.f32 %v248_v32, %v247_v25  ;;  %v253_v39 = vrot.slane %v252_v56, 4  ;;  %v260_v40 = vrot.slane %v259_v26, 4 }
  0xcd   :  { %v1397_v34 = vadd.f32 %v243_v28, %v242_v36  ;;  %v267_v27 = vrot.slane %v266_v33, 4  ;;  %v273_v41 = vsel %vm1862_vm0, %v1368_v13, -inf  ;;  %v280_v42 = vsel %vm1862_vm0, %v1380_v23, -inf }
  0xce   :  { %v1403_v43 = vadd.f32 %v250_v35, %v249_v57  ;;  %v254_v44 = vmax.f32 %v252_v56, %v253_v39  ;;  %v261_v45 = vmax.f32 %v259_v26, %v260_v40  ;;  %v274_v46 = vrot.slane %v273_v41, 4 }
  0xcf   :  { %v268_v47 = vmax.f32 %v266_v33, %v267_v27  ;;  %v281_v48 = vrot.slane %v280_v42, 4  ;;  %v287_v49 = vsel %vm1862_vm0, %v1395_v37, -inf  ;;  %v294_v50 = vsel %vm1862_vm0, %v1397_v34, -inf }
  0xd0   :  { %v255_v51 = vrot.slane %v254_v44, 2  ;;  %v262_v52 = vrot.slane %v261_v45, 2  ;;  %v275_v53 = vmax.f32 %v273_v41, %v274_v46  ;;  %v288_v31 = vrot.slane %v287_v49, 4 }
  0xd1   :  { %v269_v54 = vrot.slane %v268_v47, 2  ;;  %v282_v58 = vmax.f32 %v280_v42, %v281_v48  ;;  %v295_v59 = vrot.slane %v294_v50, 4  ;;  %v301_v60 = vsel %vm1862_vm0, %v1403_v43, -inf }
  0xd2   :  { %v256_v61 = vmax.f32 %v254_v44, %v255_v51  ;;  %v263_v62 = vmax.f32 %v261_v45, %v262_v52  ;;  %v276_v0 = vrot.slane %v275_v53, 2  ;;  %v289_v1 = vmax.f32 %v287_v49, %v288_v31 }
  0xd3   :  { %v270_v3 = vmax.f32 %v268_v47, %v269_v54  ;;  %v283_v4 = vrot.slane %v282_v58, 2  ;;  %v296_v5 = vmax.f32 %v294_v50, %v295_v59  ;;  %v302_v6 = vrot.slane %v301_v60, 4 }
  0xd4   :  { %v257_v8 = vrot.slane %v256_v61, 1  ;;  %v264_v9 = vrot.slane %v263_v62, 1  ;;  %v277_v10 = vmax.f32 %v275_v53, %v276_v0  ;;  %v290_v14 = vrot.slane %v289_v1, 2 }
  0xd5   :  { %v271_v15 = vrot.slane %v270_v3, 1  ;;  %v284_v16 = vmax.f32 %v282_v58, %v283_v4  ;;  %v297_v17 = vrot.slane %v296_v5, 2  ;;  %v303_v18 = vmax.f32 %v301_v60, %v302_v6 }
  0xd6   :  { %v258_v19 = vmax.f32 %v256_v61, %v257_v8  ;;  %v265_v20 = vmax.f32 %v263_v62, %v264_v9  ;;  %v278_v21 = vrot.slane %v277_v10, 1  ;;  %v291_v22 = vmax.f32 %v289_v1, %v290_v14 }
  0xd7   :  { %v272_v24 = vmax.f32 %v270_v3, %v271_v15  ;;  %v285_v28 = vrot.slane %v284_v16, 1  ;;  %v298_v55 = vmax.f32 %v296_v5, %v297_v17  ;;  %v304_v29 = vrot.slane %v303_v18, 2 }
  0xd8   :  { %v279_v25 = vmax.f32 %v277_v10, %v278_v21  ;;  %v292_v32 = vrot.slane %v291_v22, 1  ;;  %v308_v35 = vsub.f32 %v1359_v7, %v258_v19  ;;  %v309_v36 = vsub.f32 %v1364_v11, %v265_v20 }
  0xd9   :  { %v286_v56 = vmax.f32 %v284_v16, %v285_v28  ;;  %v299_v26 = vrot.slane %v298_v55, 1  ;;  %v305_v33 = vmax.f32 %v303_v18, %v304_v29  ;;  %v310_v57 = vsub.f32 %v1366_v12, %v272_v24 }
  0xda   :  { %v293_v39 = vmax.f32 %v291_v22, %v292_v32  ;;  %v311_v40 = vsub.f32 %v1368_v13, %v279_v25  ;;  %v316_v27 = vmul.f32 1.442695, %v308_v35  ;;  %v318_v41 = vmul.f32 1.442695, %v309_v36 }
  0xdb   :  { %v300_v42 = vmax.f32 %v298_v55, %v299_v26  ;;  %v306_v44 = vrot.slane %v305_v33, 1  ;;  %v312_v45 = vsub.f32 %v1380_v23, %v286_v56  ;;  %v320_v46 = vmul.f32 1.442695, %v310_v57 }
  0xdc   :  { %v313_v47 = vsub.f32 %v1395_v37, %v293_v39  ;;  %1124 = vpow2.f32 %v316_v27  ;;  %v322_v7 = vmul.f32 1.442695, %v311_v40 }
  0xdd   :  { %v307_v11 = vmax.f32 %v305_v33, %v306_v44  ;;  %v314_v48 = vsub.f32 %v1397_v34, %v300_v42  ;;  %1126 = vpow2.f32 %v318_v41  ;;  %v324_v49 = vmul.f32 1.442695, %v312_v45 }
  0xde   :  { %1128 = vpow2.f32 %v320_v46  ;;  %v326_v12 = vmul.f32 1.442695, %v313_v47 }
  0xdf   :  { %v315_v13 = vsub.f32 %v1403_v43, %v307_v11  ;;  %1130 = vpow2.f32 %v322_v7  ;;  %v328_v50 = vmul.f32 1.442695, %v314_v48 }
  0xe0   :  { %1132 = vpow2.f32 %v324_v49 }
  0xe1   :  { %1134 = vpow2.f32 %v326_v12  ;;  %v330_v51 = vmul.f32 1.442695, %v315_v13 }
  0xe2   :  { %v1419_v23 = vpop.eup %1124  ;;  %1136 = vpow2.f32 %v328_v50 }
  0xe3   :  { %v1421_v37 = vpop.eup %1126  ;;  %1138 = vpow2.f32 %v330_v51  ;;  %v332_v34 = vsel %vm1862_vm0, %v1419_v23, 0.0 }
  0xe4   :  { %v1425_v52 = vpop.eup %1128  ;;  %v333_v53 = vrot.slane %v332_v34, 4  ;;  %v339_v43 = vsel %vm1862_vm0, %v1421_v37, 0.0 }
  0xe5   :  { %v1429_v31 = vpop.eup %1130  ;;  %v340_v54 = vrot.slane %v339_v43, 4  ;;  %v346_v58 = vsel %vm1862_vm0, %v1425_v52, 0.0 }
  0xe6   :  { %v1433_v59 = vpop.eup %1132  ;;  %v334_v60 = vadd.f32 %v333_v53, %v332_v34  ;;  %v347_v61 = vrot.slane %v346_v58, 4  ;;  %v353_v62 = vsel %vm1862_vm0, %v1429_v31, 0.0 }
  0xe7   :  { %v1437_v0 = vpop.eup %1134  ;;  %v341_v1 = vadd.f32 %v340_v54, %v339_v43  ;;  %v354_v3 = vrot.slane %v353_v62, 4  ;;  %v360_v4 = vsel %vm1862_vm0, %v1433_v59, 0.0 }
  0xe8   :  { %v1441_v5 = vpop.eup %1136  ;;  %v335_v6 = vrot.slane %v334_v60, 2  ;;  %v348_v8 = vadd.f32 %v347_v61, %v346_v58  ;;  %v361_v9 = vrot.slane %v360_v4, 4  ;;  %v367_v10 = vsel %vm1862_vm0, %v1437_v0, 0.0 }
  0xe9   :  { %v1445_v14 = vpop.eup %1138  ;;  %v342_v15 = vrot.slane %v341_v1, 2  ;;  %v355_v16 = vadd.f32 %v354_v3, %v353_v62  ;;  %v368_v17 = vrot.slane %v367_v10, 4  ;;  %v374_v18 = vsel %vm1862_vm0, %v1441_v5, 0.0 }
  0xea   :  { %v336_v19 = vadd.f32 %v335_v6, %v334_v60  ;;  %v349_v20 = vrot.slane %v348_v8, 2  ;;  %v362_v21 = vadd.f32 %v361_v9, %v360_v4  ;;  %v375_v22 = vrot.slane %v374_v18, 4 }
  0xeb   :  { %v343_v24 = vadd.f32 %v342_v15, %v341_v1  ;;  %v356_v28 = vrot.slane %v355_v16, 2  ;;  %v369_v55 = vadd.f32 %v368_v17, %v367_v10  ;;  %v381_v29 = vsel %vm1862_vm0, %v1445_v14, 0.0 }
  0xec   :  { %v337_v25 = vrot.slane %v336_v19, 1  ;;  %v350_v32 = vadd.f32 %v349_v20, %v348_v8  ;;  %v363_v35 = vrot.slane %v362_v21, 2  ;;  %v376_v36 = vadd.f32 %v375_v22, %v374_v18 }
  0xed   :  { %v344_v56 = vrot.slane %v343_v24, 1  ;;  %v357_v26 = vadd.f32 %v356_v28, %v355_v16  ;;  %v370_v33 = vrot.slane %v369_v55, 2  ;;  %v382_v57 = vrot.slane %v381_v29, 4 }
  0xee   :  { %v1451_v39 = vadd.f32 %v337_v25, %v336_v19  ;;  %v351_v40 = vrot.slane %v350_v32, 1  ;;  %v364_v27 = vadd.f32 %v363_v35, %v362_v21  ;;  %v377_v41 = vrot.slane %v376_v36, 2 }
  0xef   :  { %v1453_v42 = vadd.f32 %v344_v56, %v343_v24  ;;  %v358_v44 = vrot.slane %v357_v26, 1  ;;  %v371_v45 = vadd.f32 %v370_v33, %v369_v55  ;;  %v383_v46 = vadd.f32 %v382_v57, %v381_v29 }
  0xf0   :  { %v378_v47 = vadd.f32 %v377_v41, %v376_v36  ;;  %1140 = vrcp.f32 %v1451_v39  ;;  %v1456_v7 = vadd.f32 %v351_v40, %v350_v32  ;;  %v365_v11 = vrot.slane %v364_v27, 1 }
  0xf1   :  { %v384_v48 = vrot.slane %v383_v46, 2  ;;  %v1458_v49 = vadd.f32 %v358_v44, %v357_v26  ;;  %v372_v12 = vrot.slane %v371_v45, 1  ;;  %1142 = vrcp.f32 %v1453_v42 }
  0xf2   :  { %v379_v13 = vrot.slane %v378_v47, 1  ;;  %v397_v51 = vand.u32 2147483647, %v1451_v39  ;;  %v399_v34 = vand.u32 2147483648, %v1451_v39  ;;  %v1463_v53 = vadd.f32 %v365_v11, %v364_v27 }
  0xf3   :  { %v385_v50 = vadd.f32 %v384_v48, %v383_v46  ;;  %1144 = vrcp.f32 %v1456_v7  ;;  %v411_v58 = vand.u32 2147483647, %v1453_v42  ;;  %v413_v60 = vand.u32 2147483648, %v1453_v42 }
  0xf4   :  { %v427_v61 = vand.u32 2147483648, %v1456_v7  ;;  %1146 = vrcp.f32 %v1458_v49  ;;  %v1470_v62 = vadd.f32 %v372_v12, %v371_v45  ;;  %v1472_v1 = vadd.f32 %v379_v13, %v378_v47 }
  0xf5   :  { %v386_v43 = vrot.slane %v385_v50, 1  ;;  %vm393_vm1 = vweird.f32 %v1451_v39  ;;  %vm1478_vm2 = vcmp.eq.f32.partialorder %v397_v51, 8.507059e+37  ;;  %v400_v8 = vor.u32 1.1754944e-38, %v399_v34 }
  0xf6   :  { %v1141_v54 = vpop.eup %1140  ;;  %vm407_vm3 = vweird.f32 %v1453_v42  ;;  %v425_v9 = vand.u32 2147483647, %v1456_v7  ;;  %v441_v16 = vand.u32 2147483648, %v1458_v49  ;;  %1148 = vrcp.f32 %v1463_v53 }
  0xf7   :  { %v389_v3 = vmul.f32 %v1141_v54, %v1451_v39  ;;  %v1476_v4 = vadd.f32 %v386_v43, %v385_v50  ;;  %v1143_v10 = vpop.eup %1142  ;;  %vm394_vm4 = vweird.f32 %v1141_v54  ;;  %vm1487_vm5 = vcmp.eq.f32.partialorder %v411_v58, 8.507059e+37 }
  0xf8   :  { %v403_v17 = vmul.f32 %v1143_v10, %v1453_v42  ;;  %v414_v19 = vor.u32 1.1754944e-38, %v413_v60  ;;  %vm421_vm6 = vweird.f32 %v1456_v7  ;;  %v428_v20 = vor.u32 1.1754944e-38, %v427_v61  ;;  %vm1506_vm11 = vmor %vm393_vm1, %vm394_vm4 }
  0xf9   :  { %v390_v15 = vsub.f32 1.0, %v389_v3  ;;  %v439_v21 = vand.u32 2147483647, %v1458_v49  ;;  %v1145_v22 = vpop.eup %1144  ;;  %vm408_vm7 = vweird.f32 %v1143_v10  ;;  %vm435_vm8 = vweird.f32 %v1458_v49 }
  0xfa   :  { %1150 = vrcp.f32 %v1470_v62  ;;  %v1147_v28 = vpop.eup %1146  ;;  %v404_v55 = vsub.f32 1.0, %v403_v17  ;;  %v417_v29 = vmul.f32 %v1145_v22, %v1456_v7  ;;  %v453_v25 = vand.u32 2147483647, %v1463_v53  ;;  %vm409_vm1 = vmor %vm407_vm3, %vm408_vm7 }
  0xfb   :  { %v391_v24 = vmul.f32 %v1141_v54, %v390_v15  ;;  %v455_v32 = vand.u32 2147483648, %v1463_v53  ;;  %vm422_vm9 = vweird.f32 %v1145_v22  ;;  %vm1498_vm10 = vcmp.eq.f32.partialorder %v425_v9, 8.507059e+37 }
  0xfc   :  { %v431_v56 = vmul.f32 %v1147_v28, %v1458_v49  ;;  %v442_v26 = vor.u32 1.1754944e-38, %v441_v16  ;;  %v405_v57 = vmul.f32 %v1143_v10, %v404_v55  ;;  %v418_v40 = vsub.f32 1.0, %v417_v29  ;;  %v1149_v44 = vpop.eup %1148 }
  0xfd   :  { %v392_v35 = vadd.f32 %v1141_v54, %v391_v24  ;;  %vm436_vm12 = vweird.f32 %v1147_v28  ;;  %vm1510_vm13 = vcmp.eq.f32.partialorder %v439_v21, 8.507059e+37  ;;  %vm449_vm14 = vweird.f32 %v1463_v53 }
  0xfe   :  { %v467_v41 = vand.u32 2147483647, %v1470_v62  ;;  %v432_v39 = vsub.f32 1.0, %v431_v56  ;;  %v469_v46 = vand.u32 2147483648, %v1470_v62  ;;  %1152 = vrcp.f32 %v1472_v1  ;;  %vm437_vm7 = vmor %vm435_vm8, %vm436_vm12 }
  0xff   :  { %v396_v45 = vsel %vm1506_vm11, %v1141_v54, %v392_v35  ;;  %v406_v47 = vadd.f32 %v1143_v10, %v405_v57  ;;  %v419_v11 = vmul.f32 %v1145_v22, %v418_v40  ;;  %v445_v48 = vmul.f32 %v1149_v44, %v1463_v53 }
 0x100   :  { %vm1521_vm15 = vcmp.eq.f32.partialorder %v453_v25, 8.507059e+37  ;;  %v456_v13 = vor.u32 1.1754944e-38, %v455_v32  ;;  %v1151_v50 = vpop.eup %1150  ;;  %v401_v51 = vsel %vm1478_vm2, %v400_v8, %v396_v45  ;;  %v433_v34 = vmul.f32 %v1147_v28, %v432_v39  ;;  %vm423_vm2 = vmor %vm421_vm6, %vm422_vm9 }
 0x101   :  { %vm450_vm4 = vweird.f32 %v1149_v44  ;;  %vm463_vm11 = vweird.f32 %v1470_v62  ;;  %v410_v43 = vsel %vm409_vm1, %v1143_v10, %v406_v47  ;;  %v420_v54 = vadd.f32 %v1145_v22, %v419_v11 }
 0x102   :  { %v446_v58 = vsub.f32 1.0, %v445_v48  ;;  %v459_v60 = vmul.f32 %v1151_v50, %v1470_v62  ;;  %vm1532_vm0 = vcmp.eq.f32.partialorder %v467_v41, 8.507059e+37  ;;  %v415_v3 = vsel %vm1487_vm5, %v414_v19, %v410_v43  ;;  %vm451_vm6 = vmor %vm449_vm14, %vm450_vm4 }
 0x103   :  { %v434_v42 = vadd.f32 %v1147_v28, %v433_v34  ;;  %vm464_vm3 = vweird.f32 %v1151_v50  ;;  %v470_v6 = vor.u32 1.1754944e-38, %v469_v46  ;;  %v424_v8 = vsel %vm423_vm2, %v1145_v22, %v420_v54 }
 0x104   :  { %v447_v9 = vmul.f32 %v1149_v44, %v446_v58  ;;  %v460_v10 = vsub.f32 1.0, %v459_v60  ;;  %v481_v15 = vand.u32 2147483647, %v1472_v1  ;;  %v1153_v16 = vpop.eup %1152  ;;  %vm477_vm5 = vweird.f32 %v1472_v1 }
 0x105   :  { %v438_v17 = vsel %vm437_vm7, %v1147_v28, %v434_v42  ;;  %v483_v18 = vand.u32 2147483648, %v1472_v1  ;;  %1154 = vrcp.f32 %v1476_v4  ;;  %v429_v7 = vsel %vm1498_vm10, %v428_v20, %v424_v8  ;;  %vm465_vm10 = vmor %vm463_vm11, %vm464_vm3 }
 0x106   :  { %v448_v19 = vadd.f32 %v1149_v44, %v447_v9  ;;  %v461_v21 = vmul.f32 %v1151_v50, %v460_v10  ;;  %v473_v49 = vmul.f32 %v1153_v16, %v1472_v1  ;;  %v443_v22 = vsel %vm1510_vm13, %v442_v26, %v438_v17 }
 0x107   :  { %vm478_vm8 = vweird.f32 %v1153_v16  ;;  %vm1556_vm9 = vcmp.eq.f32.partialorder %v481_v15, 8.507059e+37  ;;  %v484_v28 = vor.u32 1.1754944e-38, %v483_v18  ;;  %v495_v25 = vand.u32 2147483647, %v1476_v4 }
 0x108   :  { %v452_v55 = vsel %vm451_vm6, %v1149_v44, %v448_v19  ;;  %v462_v29 = vadd.f32 %v1151_v50, %v461_v21  ;;  %v474_v20 = vsub.f32 1.0, %v473_v49  ;;  %v497_v53 = vand.u32 2147483648, %v1476_v4 }
 0x109   :  { %v457_v32 = vsel %vm1521_vm15, %v456_v13, %v452_v55  ;;  %v1568_v35 = vmul.f32 %v1419_v23, %v401_v51  ;;  %v1571_v36 = vmul.f32 %v1421_v37, %v415_v3  ;;  %vm491_vm12 = vweird.f32 %v1476_v4 }
 0x10a   :  { %v466_v56 = vsel %vm465_vm10, %v1151_v50, %v462_v29  ;;  %v475_v26 = vmul.f32 %v1153_v16, %v474_v20  ;;  %v1575_v33 = vmul.f32 %v1425_v52, %v429_v7  ;;  %v498_v40 = vor.u32 1.1754944e-38, %v497_v53 }
 0x10b   :  { %v1155_v57 = vpop.eup %1154  ;;  %v471_v62 = vsel %vm1532_vm0, %v470_v6, %v466_v56  ;;  %v1580_v27 = vmul.f32 %v1429_v31, %v443_v22  ;;  %v1583_v23 = vmul.f32 %v1433_v59, %v457_v32  ;;  %vm1586_vm14 = vcmp.eq.f32.partialorder %v495_v25, 8.507059e+37  ;;  %vm479_vm0 = vmor %vm477_vm5, %vm478_vm8 }
 0x10c   :  { %v476_v37 = vadd.f32 %v1153_v16, %v475_v26  ;;  %v487_v41 = vmul.f32 %v1155_v57, %v1476_v4  ;;  %vm492_vm13 = vweird.f32 %v1155_v57  ;;  %v1591_v52 = vmul.f32 %v1437_v0, %v471_v62 }
 0x10d   :  { %v508_v31 = vmul.f32 %v1568_v35, %v1254_v2  ;;  %v509_v59 = vmul.f32 %v1571_v36, %v1254_v2  ;;  %v510_v45 = vmul.f32 %v1575_v33, %v1254_v2  ;;  %v511_v39 = vmul.f32 %v1580_v27, %v1254_v2  ;;  %vm493_vm7 = vmor %vm491_vm12, %vm492_vm13 }
 0x10e   :  { %v480_v46 = vsel %vm479_vm0, %v1153_v16, %v476_v37  ;;  %v488_v47 = vsub.f32 1.0, %v487_v41  ;;  %v512_v0 = vmul.f32 %v1583_v23, %v1254_v2  ;;  %v513_v1 = vmul.f32 %v1591_v52, %v1254_v2 }
 0x10f   :  { %v485_v11 = vsel %vm1556_vm9, %v484_v28, %v480_v46  ;;  %vm1881_vm15 = vcmask 130048   ;;  %vm796_vm8 = vcmask 1041409   ;;  %vm798_vm9 = vcmask 1042434  }
 0x110   :  { %v540_v48 = vsel %vm1881_vm15, %v508_v31, 0.0  ;;  %vm1882_vm1 = vmmov %vm1881_vm15  ;;  %v489_v50 = vmul.f32 %v1155_v57, %v488_v47  ;;  %v1614_v51 = vmul.f32 %v1441_v5, %v485_v11  ;;  %vm800_vm10 = vcmask 1043459  }
 0x111   :  { %v547_v12 = vsel %vm1882_vm1, %v509_v59, 0.0  ;;  %vm1883_vm4 = vmmov %vm1882_vm1  ;;  %v541_v34 = vrot.slane %v540_v48, 4  ;;  %vm802_vm12 = vcmask 1044484   ;;  %vm804_vm13 = vcmask 1045509  }
 0x112   :  { %v554_v13 = vsel %vm1883_vm4, %v510_v45, 0.0  ;;  %v548_v43 = vrot.slane %v547_v12, 4  ;;  %vm1884_vm11 = vmmov %vm1882_vm1  ;;  %v490_v3 = vadd.f32 %v1155_v57, %v489_v50  ;;  %v514_v42 = vmul.f32 %v1614_v51, %v1254_v2 }
 0x113   :  { %v555_v54 = vrot.slane %v554_v13, 4  ;;  %v561_v58 = vsel %vm1884_vm11, %v511_v39, 0.0  ;;  %vm1885_vm2 = vmmov %vm1882_vm1  ;;  %v542_v6 = vadd.f32 %v541_v34, %v540_v48  ;;  %vm808_vm0 = vcmask 1047559  }
 0x114   :  { %v568_v60 = vsel %vm1885_vm2, %v512_v0, 0.0  ;;  %vm1886_vm3 = vmmov %vm1882_vm1  ;;  %v549_v8 = vadd.f32 %v548_v43, %v547_v12  ;;  %v562_v9 = vrot.slane %v561_v58, 4  ;;  %v494_v16 = vsel %vm493_vm7, %v1155_v57, %v490_v3 }
 0x115   :  { %v575_v61 = vsel %vm1886_vm3, %v513_v1, 0.0  ;;  %v556_v5 = vadd.f32 %v555_v54, %v554_v13  ;;  %v569_v10 = vrot.slane %v568_v60, 4  ;;  %v543_v17 = vrot.slane %v542_v6, 2  ;;  %vm1887_vm5 = vmmov %vm1882_vm1 }
 0x116   :  { %v576_v15 = vrot.slane %v575_v61, 4  ;;  %v550_v18 = vrot.slane %v549_v8, 2  ;;  %v582_v7 = vsel %vm1887_vm5, %v514_v42, 0.0  ;;  %v499_v19 = vsel %vm1586_vm14, %v498_v40, %v494_v16  ;;  %vm1888_vm6 = vmmov %vm1882_vm1 }
 0x117   :  { %v557_v21 = vrot.slane %v556_v5, 2  ;;  %v563_v49 = vadd.f32 %v562_v9, %v561_v58  ;;  %v570_v22 = vadd.f32 %v569_v10, %v568_v60  ;;  %v1628_v24 = vmul.f32 %v1445_v14, %v499_v19  ;;  %vm1889_vm15 = vmmov %vm1882_vm1 }
 0x118   :  { %v544_v4 = vadd.f32 %v543_v17, %v542_v6  ;;  %v551_v28 = vadd.f32 %v550_v18, %v549_v8  ;;  %v577_v55 = vadd.f32 %v576_v15, %v575_v61  ;;  %v583_v32 = vrot.slane %v582_v7, 4  ;;  %vm1890_vm4 = vmmov %vm1882_vm1 }
 0x119   :  { %v558_v29 = vadd.f32 %v557_v21, %v556_v5  ;;  %v564_v20 = vrot.slane %v563_v49, 2  ;;  %v571_v25 = vrot.slane %v570_v22, 2  ;;  %v515_v53 = vmul.f32 %v1628_v24, %v1254_v2  ;;  %vm1891_vm11 = vmmov %vm1882_vm1 }
 0x11a   :  { %v545_v56 = vrot.slane %v544_v4, 1  ;;  %v552_v26 = vrot.slane %v551_v28, 1  ;;  %v578_v57 = vrot.slane %v577_v55, 2  ;;  %v584_v41 = vadd.f32 %v583_v32, %v582_v7  ;;  %vm1892_vm2 = vmmov %vm1882_vm1 }
 0x11b   :  { %v559_v62 = vrot.slane %v558_v29, 1  ;;  %v565_v40 = vadd.f32 %v564_v20, %v563_v49  ;;  %v572_v37 = vadd.f32 %v571_v25, %v570_v22  ;;  %v589_v59 = vsel %vm1888_vm6, %v515_v53, 0.0  ;;  %vm1893_vm3 = vmmov %vm1882_vm1 }
 0x11c   :  { %v546_v44 = vadd.f32 %v545_v56, %v544_v4  ;;  %v553_v14 = vadd.f32 %v552_v26, %v551_v28  ;;  %v579_v31 = vadd.f32 %v578_v57, %v577_v55  ;;  %v585_v47 = vrot.slane %v584_v41, 2  ;;  %vm1894_vm7 = vmmov %vm1882_vm1 }
 0x11d   :  { %v560_v45 = vadd.f32 %v559_v62, %v558_v29  ;;  %v566_v39 = vrot.slane %v565_v40, 1  ;;  %v573_v46 = vrot.slane %v572_v37, 1  ;;  %v590_v1 = vrot.slane %v589_v59, 4  ;;  %vm1895_vm5 = vmmov %vm1882_vm1 }
 0x11e   :  { %v580_v0 = vrot.slane %v579_v31, 1  ;;  %v586_v48 = vadd.f32 %v585_v47, %v584_v41  ;;  %v797_v12 = vsel %vm796_vm8, %v553_v14, %v546_v44  ;;  %vm806_vm14 = vcmask 1046534   ;;  %vm1896_vm6 = vmmov %vm1882_vm1 }
 0x11f   :  { %v567_v2 = vadd.f32 %v566_v39, %v565_v40  ;;  %v574_v11 = vadd.f32 %v573_v46, %v572_v37  ;;  %v591_v50 = vadd.f32 %v590_v1, %v589_v59  ;;  %v799_v34 = vsel %vm798_vm9, %v560_v45, %v797_v12 }
 0x120   :  { %v581_v13 = vadd.f32 %v580_v0, %v579_v31  ;;  %v587_v43 = vrot.slane %v586_v48, 1  ;;  %v516_v42 = vmul.f32 %v1568_v35, %v1276_v30  ;;  %v517_v6 = vmul.f32 %v1571_v36, %v1276_v30 }
 0x121   :  { %v801_v54 = vsel %vm800_vm10, %v567_v2, %v799_v34  ;;  %v592_v58 = vrot.slane %v591_v50, 2  ;;  %v518_v5 = vmul.f32 %v1575_v33, %v1276_v30  ;;  %v519_v9 = vmul.f32 %v1580_v27, %v1276_v30 }
 0x122   :  { %v803_v60 = vsel %vm802_vm12, %v574_v11, %v801_v54  ;;  %v588_v61 = vadd.f32 %v587_v43, %v586_v48  ;;  %v520_v10 = vmul.f32 %v1583_v23, %v1276_v30  ;;  %v521_v16 = vmul.f32 %v1591_v52, %v1276_v30 }
 0x123   :  { %v805_v3 = vsel %vm804_vm13, %v581_v13, %v803_v60  ;;  %v593_v8 = vadd.f32 %v592_v58, %v591_v50  ;;  %v522_v17 = vmul.f32 %v1614_v51, %v1276_v30  ;;  %v523_v18 = vmul.f32 %v1628_v24, %v1276_v30 }
 0x124   :  { %v807_v15 = vsel %vm806_vm14, %v588_v61, %v805_v3  ;;  %v596_v19 = vsel %vm1889_vm15, %v516_v42, 0.0  ;;  %v603_v21 = vsel %vm1882_vm1, %v517_v6, 0.0  ;;  %v610_v49 = vsel %vm1890_vm4, %v518_v5, 0.0  ;;  %vm1897_vm15 = vmmov %vm1882_vm1 }
 0x125   :  { %v594_v7 = vrot.slane %v593_v8, 1  ;;  %v597_v22 = vrot.slane %v596_v19, 4  ;;  %v604_v4 = vrot.slane %v603_v21, 4  ;;  %v611_v28 = vrot.slane %v610_v49, 4  ;;  %vm1898_vm4 = vmmov %vm1882_vm1 }
 0x126   :  { %v617_v55 = vsel %vm1891_vm11, %v519_v9, 0.0  ;;  %v624_v25 = vsel %vm1892_vm2, %v520_v10, 0.0  ;;  %v631_v32 = vsel %vm1893_vm3, %v521_v16, 0.0  ;;  %v638_v37 = vsel %vm1894_vm7, %v522_v17, 0.0  ;;  %vm1899_vm11 = vmmov %vm1882_vm1 }
 0x127   :  { %v595_v29 = vadd.f32 %v594_v7, %v593_v8  ;;  %v618_v20 = vrot.slane %v617_v55, 4  ;;  %v598_v53 = vadd.f32 %v597_v22, %v596_v19  ;;  %v605_v30 = vadd.f32 %v604_v4, %v603_v21  ;;  %vm1900_vm2 = vmmov %vm1882_vm1 }
 0x128   :  { %v612_v56 = vadd.f32 %v611_v28, %v610_v49  ;;  %v625_v26 = vrot.slane %v624_v25, 4  ;;  %v632_v40 = vrot.slane %v631_v32, 4  ;;  %v639_v39 = vrot.slane %v638_v37, 4  ;;  %vm1901_vm3 = vmmov %vm1882_vm1 }
 0x129   :  { %v809_v57 = vsel %vm808_vm0, %v595_v29, %v807_v15  ;;  %v619_v62 = vadd.f32 %v618_v20, %v617_v55  ;;  %v599_v41 = vrot.slane %v598_v53, 2  ;;  %v606_v44 = vrot.slane %v605_v30, 2  ;;  %vm1902_vm7 = vmmov %vm1882_vm1 }
 0x12a   :  { %835 = vxpose.xlu1.b32.start [1/4] (short) (narrow) %v809_v57, 16  ;;  %v613_v14 = vrot.slane %v612_v56, 2  ;;  %v626_v31 = vadd.f32 %v625_v26, %v624_v25  ;;  %v633_v45 = vadd.f32 %v632_v40, %v631_v32  ;;  %v645_v46 = vsel %vm1895_vm5, %v523_v18, 0.0  ;;  %vm1903_vm5 = vmmov %vm1882_vm1 }
 0x12b   :  { %v620_v59 = vrot.slane %v619_v62, 2  ;;  %v600_v47 = vadd.f32 %v599_v41, %v598_v53  ;;  %v607_v0 = vadd.f32 %v606_v44, %v605_v30  ;;  %v640_v12 = vadd.f32 %v639_v39, %v638_v37 }
 0x12c   :  { %v614_v1 = vadd.f32 %v613_v14, %v612_v56  ;;  %v627_v2 = vrot.slane %v626_v31, 2  ;;  %v634_v48 = vrot.slane %v633_v45, 2  ;;  %v646_v13 = vrot.slane %v645_v46, 4 }
 0x12d   :  { %v621_v11 = vadd.f32 %v620_v59, %v619_v62  ;;  %v601_v50 = vrot.slane %v600_v47, 1  ;;  %v608_v34 = vrot.slane %v607_v0, 1  ;;  %v641_v61 = vrot.slane %v640_v12, 2 }
 0x12e   :  { %v615_v43 = vrot.slane %v614_v1, 1  ;;  %v628_v54 = vadd.f32 %v627_v2, %v626_v31  ;;  %v635_v60 = vadd.f32 %v634_v48, %v633_v45  ;;  %v647_v3 = vadd.f32 %v646_v13, %v645_v46 }
 0x12f   :  { %v622_v58 = vrot.slane %v621_v11, 1  ;;  %v602_v42 = vadd.f32 %v601_v50, %v600_v47  ;;  %v609_v6 = vadd.f32 %v608_v34, %v607_v0  ;;  %v642_v15 = vadd.f32 %v641_v61, %v640_v12 }
 0x130   :  { %v616_v8 = vadd.f32 %v615_v43, %v614_v1  ;;  %v629_v5 = vrot.slane %v628_v54, 1  ;;  %v636_v10 = vrot.slane %v635_v60, 1  ;;  %v648_v16 = vrot.slane %v647_v3, 2 }
 0x131   :  { %v623_v9 = vadd.f32 %v622_v58, %v621_v11  ;;  %v810_v18 = vsel %vm796_vm8, %v609_v6, %v602_v42  ;;  %v524_v7 = vmul.f32 %v1568_v35, %v1316_v63  ;;  %v525_v19 = vmul.f32 %v1571_v36, %v1316_v63 }
 0x132   :  { %v630_v17 = vadd.f32 %v629_v5, %v628_v54  ;;  %v637_v21 = vadd.f32 %v636_v10, %v635_v60  ;;  %v643_v49 = vrot.slane %v642_v15, 1  ;;  %v649_v22 = vadd.f32 %v648_v16, %v647_v3 }
 0x133   :  { %v811_v4 = vsel %vm798_vm9, %v616_v8, %v810_v18  ;;  %v526_v55 = vmul.f32 %v1575_v33, %v1316_v63  ;;  %v527_v29 = vmul.f32 %v1580_v27, %v1316_v63  ;;  %v528_v20 = vmul.f32 %v1583_v23, %v1316_v63 }
 0x134   :  { %v812_v28 = vsel %vm800_vm10, %v623_v9, %v811_v4  ;;  %v644_v25 = vadd.f32 %v643_v49, %v642_v15  ;;  %v650_v32 = vrot.slane %v649_v22, 1  ;;  %v529_v30 = vmul.f32 %v1591_v52, %v1316_v63 }
 0x135   :  { %v813_v53 = vsel %vm802_vm12, %v630_v17, %v812_v28  ;;  %v530_v26 = vmul.f32 %v1614_v51, %v1316_v63  ;;  %v531_v57 = vmul.f32 %v1628_v24, %v1316_v63  ;;  %v652_v62 = vsel %vm1896_vm6, %v524_v7, 0.0  ;;  %vm1904_vm6 = vmmov %vm1882_vm1 }
 0x136   :  { %v814_v56 = vsel %vm804_vm13, %v637_v21, %v813_v53  ;;  %v651_v40 = vadd.f32 %v650_v32, %v649_v22  ;;  %v653_v41 = vrot.slane %v652_v62, 4  ;;  %v659_v44 = vsel %vm1897_vm15, %v525_v19, 0.0  ;;  %vm1905_vm15 = vmmov %vm1882_vm1 }
 0x137   :  { %v815_v37 = vsel %vm806_vm14, %v644_v25, %v814_v56  ;;  %v660_v14 = vrot.slane %v659_v44, 4  ;;  %v666_v31 = vsel %vm1882_vm1, %v526_v55, 0.0  ;;  %v673_v59 = vsel %vm1898_vm4, %v527_v29, 0.0  ;;  %vm1906_vm4 = vmmov %vm1882_vm1 }
 0x138   :  { %v680_v45 = vsel %vm1899_vm11, %v528_v20, 0.0  ;;  %v816_v39 = vsel %vm808_vm0, %v651_v40, %v815_v37  ;;  %v654_v46 = vadd.f32 %v653_v41, %v652_v62  ;;  %v667_v47 = vrot.slane %v666_v31, 4  ;;  %vm1907_vm11 = vmmov %vm1882_vm1 }
 0x139   :  { %v674_v63 = vrot.slane %v673_v59, 4  ;;  %836 = vxpose.xlu1.b32.cont [2/4] (short) (narrow) %v816_v39, 16  ;;  %v661_v0 = vadd.f32 %v660_v14, %v659_v44  ;;  %v681_v1 = vrot.slane %v680_v45, 4  ;;  %v687_v2 = vsel %vm1900_vm2, %v529_v30, 0.0  ;;  %vm1908_vm2 = vmmov %vm1882_vm1 }
 0x13a   :  { %v694_v11 = vsel %vm1901_vm3, %v530_v26, 0.0  ;;  %v655_v48 = vrot.slane %v654_v46, 2  ;;  %v668_v12 = vadd.f32 %v667_v47, %v666_v31  ;;  %v688_v50 = vrot.slane %v687_v2, 4  ;;  %vm1909_vm3 = vmmov %vm1882_vm1 }
 0x13b   :  { %v675_v13 = vadd.f32 %v674_v63, %v673_v59  ;;  %v662_v34 = vrot.slane %v661_v0, 2  ;;  %v682_v43 = vadd.f32 %v681_v1, %v680_v45  ;;  %v695_v54 = vrot.slane %v694_v11, 4 }
 0x13c   :  { %v701_v58 = vsel %vm1902_vm7, %v531_v57, 0.0  ;;  %v656_v60 = vadd.f32 %v655_v48, %v654_v46  ;;  %v669_v61 = vrot.slane %v668_v12, 2  ;;  %v689_v42 = vadd.f32 %v688_v50, %v687_v2 }
 0x13d   :  { %v676_v3 = vrot.slane %v675_v13, 2  ;;  %v663_v6 = vadd.f32 %v662_v34, %v661_v0  ;;  %v683_v8 = vrot.slane %v682_v43, 2  ;;  %v696_v5 = vadd.f32 %v695_v54, %v694_v11 }
 0x13e   :  { %v702_v9 = vrot.slane %v701_v58, 4  ;;  %v657_v10 = vrot.slane %v656_v60, 1  ;;  %v670_v15 = vadd.f32 %v669_v61, %v668_v12  ;;  %v690_v17 = vrot.slane %v689_v42, 2 }
 0x13f   :  { %v677_v16 = vadd.f32 %v676_v3, %v675_v13  ;;  %v664_v18 = vrot.slane %v663_v6, 1  ;;  %v684_v7 = vadd.f32 %v683_v8, %v682_v43  ;;  %v697_v19 = vrot.slane %v696_v5, 2 }
 0x140   :  { %v703_v21 = vadd.f32 %v702_v9, %v701_v58  ;;  %v658_v49 = vadd.f32 %v657_v10, %v656_v60  ;;  %v671_v22 = vrot.slane %v670_v15, 1  ;;  %v691_v28 = vadd.f32 %v690_v17, %v689_v42 }
 0x141   :  { %v678_v4 = vrot.slane %v677_v16, 1  ;;  %v665_v55 = vadd.f32 %v664_v18, %v663_v6  ;;  %v685_v29 = vrot.slane %v684_v7, 1  ;;  %v698_v20 = vadd.f32 %v697_v19, %v696_v5 }
 0x142   :  { %v704_v25 = vrot.slane %v703_v21, 2  ;;  %v672_v32 = vadd.f32 %v671_v22, %v670_v15  ;;  %v692_v30 = vrot.slane %v691_v28, 1  ;;  %v532_v56 = vmul.f32 %v1568_v35, %v1339_v38 }
 0x143   :  { %v679_v53 = vadd.f32 %v678_v4, %v677_v16  ;;  %v686_v26 = vadd.f32 %v685_v29, %v684_v7  ;;  %v699_v57 = vrot.slane %v698_v20, 1  ;;  %v817_v40 = vsel %vm796_vm8, %v665_v55, %v658_v49 }
 0x144   :  { %v705_v62 = vadd.f32 %v704_v25, %v703_v21  ;;  %v693_v37 = vadd.f32 %v692_v30, %v691_v28  ;;  %v818_v41 = vsel %vm798_vm9, %v672_v32, %v817_v40  ;;  %v533_v44 = vmul.f32 %v1571_v36, %v1339_v38 }
 0x145   :  { %v534_v14 = vmul.f32 %v1575_v33, %v1339_v38  ;;  %v700_v31 = vadd.f32 %v699_v57, %v698_v20  ;;  %v819_v45 = vsel %vm800_vm10, %v679_v53, %v818_v41  ;;  %v535_v35 = vmul.f32 %v1580_v27, %v1339_v38 }
 0x146   :  { %v706_v59 = vrot.slane %v705_v62, 1  ;;  %v820_v39 = vsel %vm802_vm12, %v686_v26, %v819_v45  ;;  %v536_v46 = vmul.f32 %v1583_v23, %v1339_v38  ;;  %v537_v47 = vmul.f32 %v1591_v52, %v1339_v38 }
 0x147   :  { %v538_v36 = vmul.f32 %v1614_v51, %v1339_v38  ;;  %v821_v33 = vsel %vm804_vm13, %v693_v37, %v820_v39  ;;  %v539_v0 = vmul.f32 %v1628_v24, %v1339_v38  ;;  %v708_v1 = vsel %vm1903_vm5, %v532_v56, 0.0 }
 0x148   :  { %v707_v63 = vadd.f32 %v706_v59, %v705_v62  ;;  %v822_v27 = vsel %vm806_vm14, %v700_v31, %v821_v33  ;;  %v709_v2 = vrot.slane %v708_v1, 4  ;;  %v715_v11 = vsel %vm1904_vm6, %v533_v44, 0.0 }
 0x149   :  { %v722_v23 = vsel %vm1905_vm15, %v534_v14, 0.0  ;;  %v716_v48 = vrot.slane %v715_v11, 4  ;;  %v729_v51 = vsel %vm1882_vm1, %v535_v35, 0.0  ;;  %v736_v38 = vsel %vm1906_vm4, %v536_v46, 0.0 }
 0x14a   :  { %v823_v52 = vsel %vm808_vm0, %v707_v63, %v822_v27  ;;  %v723_v12 = vrot.slane %v722_v23, 4  ;;  %v710_v13 = vadd.f32 %v709_v2, %v708_v1  ;;  %v730_v50 = vrot.slane %v729_v51, 4  ;;  %v1166_v2 = vld [vmem:[%s1852_s0] sm:$0xff] }
 0x14b   :  { %837 = vxpose.xlu1.b32.cont [3/4] (short) (narrow) %v823_v52, 16  ;;  %v743_v24 = vsel %vm1907_vm11, %v537_v47, 0.0  ;;  %v717_v34 = vadd.f32 %v716_v48, %v715_v11  ;;  %v737_v54 = vrot.slane %v736_v38, 4  ;;  %v750_v3 = vsel %vm1908_vm2, %v538_v36, 0.0  ;;  %v1167_v48 = vld [vmem:[%s1852_s0 + $0x8] sm:$0xff] }
 0x14c   :  { %v724_v43 = vadd.f32 %v723_v12, %v722_v23  ;;  %v744_v58 = vrot.slane %v743_v24, 4  ;;  %v711_v60 = vrot.slane %v710_v13, 2  ;;  %v731_v61 = vadd.f32 %v730_v50, %v729_v51 }
 0x14d   :  { %v757_v42 = vsel %vm1909_vm3, %v539_v0, 0.0  ;;  %v718_v6 = vrot.slane %v717_v34, 2  ;;  %v738_v5 = vadd.f32 %v737_v54, %v736_v38  ;;  %v751_v16 = vrot.slane %v750_v3, 4 }
 0x14e   :  { %v725_v8 = vrot.slane %v724_v43, 2  ;;  %v745_v9 = vadd.f32 %v744_v58, %v743_v24  ;;  %v712_v10 = vadd.f32 %v711_v60, %v710_v13  ;;  %v732_v15 = vrot.slane %v731_v61, 2 }
 0x14f   :  { %v758_v17 = vrot.slane %v757_v42, 4  ;;  %v719_v18 = vadd.f32 %v718_v6, %v717_v34  ;;  %v739_v19 = vrot.slane %v738_v5, 2  ;;  %v752_v4 = vadd.f32 %v751_v16, %v750_v3  ;;  %v935_v16 = vld [vmem:[%s1853_s1 + $0x10] sm:$0xff] }
 0x150   :  { %v726_v7 = vadd.f32 %v725_v8, %v724_v43  ;;  %v746_v21 = vrot.slane %v745_v9, 2  ;;  %v713_v49 = vrot.slane %v712_v10, 1  ;;  %v733_v22 = vadd.f32 %v732_v15, %v731_v61  ;;  %v936_v15 = vld [vmem:[%s1853_s1 + $0x18] sm:$0xff] }
 0x151   :  { %v759_v28 = vadd.f32 %v758_v17, %v757_v42  ;;  %v720_v55 = vrot.slane %v719_v18, 1  ;;  %v740_v20 = vadd.f32 %v739_v19, %v738_v5  ;;  %v753_v30 = vrot.slane %v752_v4, 2  ;;  %959 = vmatpush.msra.mxu0 %v936_v15  ;;  %v933_v19 = vld [vmem:[%s1853_s1] sm:$0xff] }
 0x152   :  { %v727_v29 = vrot.slane %v726_v7, 1  ;;  %v747_v25 = vadd.f32 %v746_v21, %v745_v9  ;;  %v714_v32 = vadd.f32 %v713_v49, %v712_v10  ;;  %v734_v53 = vrot.slane %v733_v22, 1  ;;  %v989_v49 = vld [vmem:[%s1855_s3 + $0x78] sm:$0xff] }
 0x153   :  { %v760_v56 = vrot.slane %v759_v28, 2  ;;  %v721_v26 = vadd.f32 %v720_v55, %v719_v18  ;;  %v741_v62 = vrot.slane %v740_v20, 1  ;;  %v754_v37 = vadd.f32 %v753_v30, %v752_v4  ;;  %v934_v18 = vld [vmem:[%s1853_s1 + $0x8] sm:$0xff]  ;;  %960 = vmatpush.msra.mxu0 %v935_v16  ;;  %994 = vmatpush.msra.mxu1 %v989_v49  ;;  %v984_v30 = vld [vmem:[%s1855_s3 + $0x50] sm:$0xff] }
 0x154   :  { %v728_v57 = vadd.f32 %v727_v29, %v726_v7  ;;  %v748_v40 = vrot.slane %v747_v25, 1  ;;  %v735_v44 = vadd.f32 %v734_v53, %v733_v22  ;;  %v1194_v13 = vmov 32.0   ;;  %v988_v22 = vld [vmem:[%s1855_s3 + $0x70] sm:$0xff]  ;;  %1097 = vmatpush.msra.mxu2 %v989_v49  ;;  %v987_v4 = vld [vmem:[%s1855_s3 + $0x68] sm:$0xff]  ;;  %v986_v29 = vld [vmem:[%s1855_s3 + $0x60] sm:$0xff] }
 0x155   :  { %v761_v41 = vadd.f32 %v760_v56, %v759_v28  ;;  %v824_v14 = vsel %vm796_vm8, %v721_v26, %v714_v32  ;;  %v742_v31 = vadd.f32 %v741_v62, %v740_v20  ;;  %v755_v59 = vrot.slane %v754_v37, 1  ;;  %961 = vmatpush.msra.mxu0 %v934_v18  ;;  %995 = vmatpush.msra.mxu1 %v988_v22  ;;  %v985_v32 = vld [vmem:[%s1855_s3 + $0x58] sm:$0xff]  ;;  %v983_v26 = vld [vmem:[%s1855_s3 + $0x48] sm:$0xff]  ;;  %v982_v62 = vld [vmem:[%s1855_s3 + $0x40] sm:$0xff] }
 0x156   :  { %v825_v35 = vsel %vm798_vm9, %v728_v57, %v824_v14  ;;  %v749_v39 = vadd.f32 %v748_v40, %v747_v25  ;;  %vm871_vm8 = vcmask 261120   ;;  %1156 = vrcp.f32 %v1194_v13  ;;  %1098 = vmatpush.msra.mxu2 %v988_v22  ;;  %v974_v13 = vld [vmem:[%s1855_s3] sm:$0xff] }
 0x157   :  { %v762_v45 = vrot.slane %v761_v41, 1  ;;  %v826_v46 = vsel %vm800_vm10, %v735_v44, %v825_v35  ;;  %v756_v47 = vadd.f32 %v755_v59, %v754_v37  ;;  %962 = vmatpush.msra.mxu0 %v933_v19  ;;  %996 = vmatpush.msra.mxu1 %v987_v4  ;;  %v980_v59 = vld [vmem:[%s1855_s3 + $0x30] sm:$0xff] }
 0x158   :  { %v827_v36 = vsel %vm802_vm12, %v742_v31, %v826_v46  ;;  %1099 = vmatpush.msra.mxu2 %v987_v4  ;;  %v1118_v31 = vld [vmem:[%s1857_s5] ss:$0 sm:$0xff] }
 0x159   :  { %v763_v63 = vadd.f32 %v762_v45, %v761_v41  ;;  %v828_v33 = vsel %vm804_vm13, %v749_v39, %v827_v36  ;;  %997 = vmatpush.msra.mxu1 %v986_v29  ;;  %v981_v41 = vld [vmem:[%s1855_s3 + $0x38] sm:$0xff]  ;;  %v1119_v46 = vld [vmem:[%s1858_s6] ss:$0 sm:$0xff] }
 0x15a   :  { %v829_v0 = vsel %vm806_vm14, %v756_v47, %v828_v33  ;;  %1100 = vmatpush.msra.mxu2 %v986_v29  ;;  %v979_v47 = vld [vmem:[%s1855_s3 + $0x28] sm:$0xff]  ;;  %v978_v33 = vld [vmem:[%s1855_s3 + $0x20] sm:$0xff] }
 0x15b   :  { %v830_v1 = vsel %vm808_vm0, %v763_v63, %v829_v0  ;;  %998 = vmatpush.msra.mxu1 %v985_v32 }
 0x15c   :  { %838 = vxpose.xlu1.b32.end [4/4] (short) (narrow) %v830_v1, 16  ;;  %v1157_v50 = vpop.eup %1156  ;;  %1101 = vmatpush.msra.mxu2 %v985_v32 }
 0x15d   :  { %v879_v38 = vmul.f32 32.0, %v1157_v50  ;;  %vm883_vm9 = vweird.f32 %v1157_v50  ;;  %999 = vmatpush.msra.mxu1 %v984_v30 }
 0x15e   :  { %1102 = vmatpush.msra.mxu2 %v984_v30 }
 0x15f   :  { %v880_v24 = vsub.f32 1.0, %v879_v38  ;;  %1000 = vmatpush.msra.mxu1 %v983_v26 }
 0x160   :  { %1103 = vmatpush.msra.mxu2 %v983_v26 }
 0x161   :  { %v881_v34 = vmul.f32 %v1157_v50, %v880_v24  ;;  %1001 = vmatpush.msra.mxu1 %v982_v62 }
 0x162   :  { %1104 = vmatpush.msra.mxu2 %v982_v62 }
 0x163   :  { %v882_v43 = vadd.f32 %v1157_v50, %v881_v34  ;;  %1002 = vmatpush.msra.mxu1 %v981_v41 }
 0x164   :  { %1105 = vmatpush.msra.mxu2 %v981_v41 }
 0x165   :  { %v1741_v54 = vsel %vm883_vm9, %v1157_v50, %v882_v43  ;;  %1003 = vmatpush.msra.mxu1 %v980_v59  ;;  %v1120_v50 = vld [vmem:[%s1854_s2] ss:$0 sm:$0xff] }
 0x166   :  { %1106 = vmatpush.msra.mxu2 %v980_v59  ;;  %v1123_v59 = vld [vmem:[%s1860_s8] ss:$0 sm:$0xff]  ;;  %s1083_s8 = sshll.u32 %s1861_s9, 4  ;;  %s1084_s8 = int_to_ptr.hbm [resolvable:$true] %s1083_s8 }
 0x167   :  { %1004 = vmatpush.msra.mxu1 %v979_v47 }
 0x168   :  { %1107 = vmatpush.msra.mxu2 %v979_v47 }
 0x169   :  { %1005 = vmatpush.msra.mxu1 %v978_v33 }
 0x16a   :  { %1108 = vmatpush.msra.mxu2 %v978_v33 }
 0x1e8   :  { %v851_v27 = vpop.trf.xlu1 }
 0x1e9   :  { %v869_v11 = vadd.f32 %v1166_v2, %v851_v27 }
 0x1eb   :  { %v872_v23 = vsel %vm871_vm8, %v869_v11, 0.0 }
 0x1ec   :  { %873 = vadd.xlane.f32.xlu2 %v872_v23 }
 0x1f0   :  { %v852_v52 = vpop.trf.xlu1 }
 0x1f1   :  { %v870_v12 = vadd.f32 %v1167_v48, %v852_v52  ;;  %v977_v48 = vld [vmem:[%s1855_s3 + $0x18] sm:$0xff] }
 0x1f2   :  { %1006 = vmatpush.msra.mxu1 %v977_v48  ;;  %1109 = vmatpush.msra.mxu2 %v977_v48 }
 0x1f3   :  { %v875_v51 = vsel %vm871_vm8, %v870_v12, 0.0 }
 0x1f4   :  { %876 = vadd.xlane.f32.xlu2 %v875_v51  ;;  %v975_v51 = vld [vmem:[%s1855_s3 + $0x8] sm:$0xff] }
 0x25f   :  { %v874_v58 = vpop.xlane.xlu2 %873 }
 0x260   :  { %v885_v60 = vmul.f32 %v1741_v54, %v874_v58 }
 0x262   :  { %v1744_v61 = vsub.f32 %v869_v11, %v885_v60 }
 0x264   :  { %v889_v3 = vmul.f32 %v1744_v61, %v1744_v61 }
 0x266   :  { %v891_v42 = vsel %vm871_vm8, %v889_v3, 0.0 }
 0x267   :  { %892 = vadd.xlane.f32.xlu0 %v891_v42  ;;  %v877_v6 = vpop.xlane.xlu2 %876  ;;  %v1121_v42 = vld [vmem:[%s1856_s4] ss:$0 sm:$0xff] }
 0x268   :  { %v886_v8 = vmul.f32 %v1741_v54, %v877_v6 }
 0x26a   :  { %v1750_v5 = vsub.f32 %v870_v12, %v886_v8  ;;  %v976_v12 = vld [vmem:[%s1855_s3 + $0x10] sm:$0xff] }
 0x26b   :  { %1007 = vmatpush.msra.mxu1 %v976_v12  ;;  %1110 = vmatpush.msra.mxu2 %v976_v12 }
 0x26c   :  { %v890_v9 = vmul.f32 %v1750_v5, %v1750_v5 }
 0x26d   :  { %1008 = vmatpush.msra.mxu1 %v975_v51  ;;  %1111 = vmatpush.msra.mxu2 %v975_v51 }
 0x26e   :  { %v894_v10 = vsel %vm871_vm8, %v890_v9, 0.0 }
 0x26f   :  { %895 = vadd.xlane.f32.xlu2 %v894_v10  ;;  %1009 = vmatpush.msra.mxu1 %v974_v13 }
 0x270   :  { %1112 = vmatpush.msra.mxu2 %v974_v13 }
 0x2da   :  { %v893_v17 = vpop.xlane.xlu0 %892 }
 0x2db   :  { %v897_v7 = vmul.f32 %v893_v17, %v1741_v54 }
 0x2dd   :  { %v899_v21 = vadd.f32 1e-06, %v897_v7 }
 0x2df   :  { %1158 = vrsqrt.f32 %v899_v21  ;;  %vm907_vm12 = vweird.f32 %v899_v21 }
 0x2e2   :  { %v896_v28 = vpop.xlane.xlu2 %895 }
 0x2e3   :  { %v898_v55 = vmul.f32 %v896_v28, %v1741_v54 }
 0x2e5   :  { %v1159_v20 = vpop.eup %1158  ;;  %v900_v25 = vadd.f32 1e-06, %v898_v55 }
 0x2e6   :  { %v902_v53 = vmul.f32 %v1159_v20, %v899_v21  ;;  %vm908_vm10 = vweird.f32 %v1159_v20 }
 0x2e7   :  { %1160 = vrsqrt.f32 %v900_v25  ;;  %vm909_vm13 = vmor %vm907_vm12, %vm908_vm10  ;;  %vm917_vm0 = vweird.f32 %v900_v25 }
 0x2e8   :  { %v903_v56 = vmul.f32 %v1159_v20, %v902_v53 }
 0x2ea   :  { %v904_v57 = vmul.f32 0.5, %v903_v56 }
 0x2ec   :  { %v905_v40 = vsub.f32 1.5, %v904_v57 }
 0x2ed   :  { %v1161_v37 = vpop.eup %1160 }
 0x2ee   :  { %v906_v44 = vmul.f32 %v1159_v20, %v905_v40  ;;  %v912_v14 = vmul.f32 %v1161_v37, %v900_v25  ;;  %vm918_vm14 = vweird.f32 %v1161_v37 }
 0x2ef   :  { %vm919_vm7 = vmor %vm917_vm0, %vm918_vm14 }
 0x2f0   :  { %v910_v45 = vsel %vm909_vm13, %v1159_v20, %v906_v44  ;;  %v913_v35 = vmul.f32 %v1161_v37, %v912_v14  ;;  %v1122_v44 = vld [vmem:[%s1859_s7] ss:$0 sm:$0xff]  ;;  %s1195_s7 = smov [#allocation2]  }
 0x2f1   :  { %v921_v39 = vmul.f32 %v910_v45, %v1744_v61  ;;  %s1081_s17 = sshll.u32 %s1195_s7, 4  ;;  %s1082_s17 = int_to_ptr.vmem [resolvable:$true] %s1081_s17 }
 0x2f2   :  { %v914_v36 = vmul.f32 0.5, %v913_v35 }
 0x2f3   :  { %v926_v63 = vmul.f32 %v1118_v31, %v921_v39 }
 0x2f4   :  { %v915_v0 = vsub.f32 1.5, %v914_v36 }
 0x2f5   :  { %v931_v1 = vadd.f32 %v1119_v46, %v926_v63 }
 0x2f6   :  { %v916_v27 = vmul.f32 %v1161_v37, %v915_v0 }
 0x2f7   :  { %1095 = vmatmul.msk.f32.vlgmr.msra.gmra.mxu0 %vm871_vm8, %v931_v1 }
 0x2f8   :  { %v920_v2 = vsel %vm919_vm7, %v1161_v37, %v916_v27 }
 0x2f9   :  { %v922_v11 = vmul.f32 %v920_v2, %v1750_v5 }
 0x2fb   :  { %v927_v23 = vmul.f32 %v1118_v31, %v922_v11 }
 0x2fd   :  { %v932_v52 = vadd.f32 %v1119_v46, %v927_v23 }
 0x2ff   :  { %1096 = vmatmul.msk.f32.gmra.mxu0 %vm871_vm8, %v932_v52 }
 0x374   :  { %v964_v38 = vpop.f32.mrf.mxu0 }
 0x375   :  { %v965_v24 = vadd.f32 %v1120_v50, %v964_v38 }
 0x377   :  { %v970_v34 = vmul.f32 0.01, %v965_v24 }
 0x379   :  { %v972_v43 = vmax.f32 %v965_v24, %v970_v34 }
 0x37b   :  { %1010 = vmatmul.f32.vlgmr.msra.gmra.mxu1 %v972_v43 }
 0x37c   :  { %v967_v58 = vpop.f32.mrf.mxu0 }
 0x37d   :  { %v968_v60 = vadd.f32 %v1120_v50, %v967_v58 }
 0x37f   :  { %v971_v61 = vmul.f32 0.01, %v968_v60 }
 0x381   :  { %v973_v3 = vmax.f32 %v968_v60, %v971_v61 }
 0x383   :  { %1013 = vmatmul.f32.vlgmr.msra.gmra.mxu2 %v973_v3 }
 0x3f8   :  { %v1011_v6 = vpop.f32.mrf.mxu1 }
 0x3f9   :  { %v1012_v8 = vadd.f32 %v1121_v42, %v1011_v6 }
 0x3fb   :  { %v1019_v5 = vadd.f32 %v1012_v8, %v931_v1 }
 0x3fd   :  { %v1021_v9 = vsel %vm871_vm8, %v1019_v5, 0.0 }
 0x3fe   :  { %1022 = vadd.xlane.f32.xlu2 %v1021_v9 }
 0x406   :  { %v1014_v10 = vpop.f32.mrf.mxu2 }
 0x407   :  { %v1015_v15 = vadd.f32 %v1121_v42, %v1014_v10 }
 0x409   :  { %v1020_v16 = vadd.f32 %v1015_v15, %v932_v52 }
 0x40b   :  { %v1024_v17 = vsel %vm871_vm8, %v1020_v16, 0.0 }
 0x40c   :  { %1025 = vadd.xlane.f32.xlu1 %v1024_v17 }
 0x471   :  { %v1023_v18 = vpop.xlane.xlu2 %1022 }
 0x472   :  { %v1027_v7 = vmul.f32 %v1023_v18, %v1741_v54 }
 0x474   :  { %v1029_v19 = vsub.f32 %v1019_v5, %v1027_v7 }
 0x476   :  { %v1031_v21 = vmul.f32 %v1029_v19, %v1029_v19 }
 0x478   :  { %v1033_v49 = vsel %vm871_vm8, %v1031_v21, 0.0 }
 0x479   :  { %1034 = vadd.xlane.f32.xlu2 %v1033_v49 }
 0x47f   :  { %v1026_v22 = vpop.xlane.xlu1 %1025 }
 0x480   :  { %v1028_v4 = vmul.f32 %v1026_v22, %v1741_v54 }
 0x482   :  { %v1030_v28 = vsub.f32 %v1020_v16, %v1028_v4 }
 0x484   :  { %v1032_v55 = vmul.f32 %v1030_v28, %v1030_v28 }
 0x486   :  { %v1036_v29 = vsel %vm871_vm8, %v1032_v55, 0.0 }
 0x487   :  { %1037 = vadd.xlane.f32.xlu2 %v1036_v29 }
 0x4ec   :  { %v1035_v20 = vpop.xlane.xlu2 %1034 }
 0x4ed   :  { %v1039_v25 = vmul.f32 %v1035_v20, %v1741_v54 }
 0x4ef   :  { %v1041_v32 = vadd.f32 1e-06, %v1039_v25 }
 0x4f1   :  { %1162 = vrsqrt.f32 %v1041_v32  ;;  %vm1049_vm6 = vweird.f32 %v1041_v32 }
 0x4f7   :  { %v1163_v53 = vpop.eup %1162 }
 0x4f8   :  { %v1044_v30 = vmul.f32 %v1163_v53, %v1041_v32  ;;  %vm1050_vm5 = vweird.f32 %v1163_v53 }
 0x4f9   :  { %vm1051_vm15 = vmor %vm1049_vm6, %vm1050_vm5 }
 0x4fa   :  { %v1045_v56 = vmul.f32 %v1163_v53, %v1044_v30  ;;  %v1038_v26 = vpop.xlane.xlu2 %1037 }
 0x4fb   :  { %v1040_v57 = vmul.f32 %v1038_v26, %v1741_v54 }
 0x4fc   :  { %v1046_v62 = vmul.f32 0.5, %v1045_v56 }
 0x4fd   :  { %v1042_v40 = vadd.f32 1e-06, %v1040_v57 }
 0x4fe   :  { %v1047_v37 = vsub.f32 1.5, %v1046_v62 }
 0x4ff   :  { %1164 = vrsqrt.f32 %v1042_v40  ;;  %vm1059_vm4 = vweird.f32 %v1042_v40 }
 0x500   :  { %v1048_v41 = vmul.f32 %v1163_v53, %v1047_v37 }
 0x502   :  { %v1052_v14 = vsel %vm1051_vm15, %v1163_v53, %v1048_v41 }
 0x503   :  { %v1063_v31 = vmul.f32 %v1052_v14, %v1029_v19 }
 0x505   :  { %v1165_v45 = vpop.eup %1164  ;;  %v1068_v54 = vmul.f32 %v1122_v44, %v1063_v31 }
 0x506   :  { %v1054_v35 = vmul.f32 %v1165_v45, %v1042_v40  ;;  %vm1060_vm1 = vweird.f32 %v1165_v45 }
 0x507   :  { %v1073_v39 = vadd.f32 %v1123_v59, %v1068_v54  ;;  %vm1061_vm11 = vmor %vm1059_vm4, %vm1060_vm1 }
 0x508   :  { %v1055_v46 = vmul.f32 %v1165_v45, %v1054_v35 }
 0x509   :  { %1075 = vst.msk [vmem:[#allocation2] sm:$0xff] %vm871_vm8, %v1073_v39 }
 0x50a   :  { %v1056_v47 = vmul.f32 0.5, %v1055_v46 }
 0x50c   :  { %v1057_v36 = vsub.f32 1.5, %v1056_v47 }
 0x50e   :  { %v1058_v63 = vmul.f32 %v1165_v45, %v1057_v36 }
 0x510   :  { %v1062_v33 = vsel %vm1061_vm11, %v1165_v45, %v1058_v63 }
 0x511   :  { %v1064_v0 = vmul.f32 %v1062_v33, %v1030_v28 }
 0x513   :  { %v1069_v1 = vmul.f32 %v1122_v44, %v1064_v0 }
 0x515   :  { %v1074_v27 = vadd.f32 %v1123_v59, %v1069_v1 }
 0x517   :  { %1076 = vst.msk [vmem:[#allocation2 + $0x8] sm:$0xff] %vm871_vm8, %v1074_v27 }
 0x518   :  { %1089 = dma.vmem_to_hbm [thread:$0]  %s1082_s17, 256, %s1084_s8, [#allocation3], %s1196_s20, %s1196_s20, %s1197_s21  }
 0x519   :  { %1192 = dma.done.wait [#allocation3], 256  }
 0x51a   :  { %1193 = vsyncadd [#allocation3], 4294967040 }
 0x51b   :  { %1094 = vsyncpa [#allocation3], 1 }

</bundles_post_ra>
